<compile_context>
chip_gen: v6e
topology: v6e:2x2x1
jax: 0.10.0
libtpu: 0.0.40
codegen_flags: <defaults>
</compile_context>

<pallas_src>
import jax
import jax.numpy as jnp
import numpy as np
from jax import lax
from jax.experimental import pallas as pl
from jax.experimental.pallas import tpu as pltpu

BN_EPS = 1e-5
ACT_DTYPE = jnp.bfloat16      # intermediate chunk activations (HBM + strips)
MM_DTYPE = jnp.bfloat16       # MXU operand dtype; accumulation is always f32


def _round_up(x, m):
    return ((x + m - 1) // m) * m


def _tpu_vmem_capacity():
    try:
        cap = int(pltpu.get_tpu_info().vmem_capacity_bytes)
        if cap > 0:
            return cap
    except Exception:
        pass
    return 64 * 1024 * 1024          # conservative (v7x per-core) fallback


def _silu_f32(y):
    # sigmoid = 1 / (1 + exp(-y)); exp and the approximate reciprocal both run
    # on the (otherwise idle) EUP slot instead of a VPU divide.
    return y * pl.reciprocal(1.0 + jnp.exp(-y), approx=True)


def _pointwise_tile(rows):
    """Pick a row tile so tail padding is bounded (<= 16 per tile) not ~a full tile."""
    nt = max(1, -(-rows // 1024))
    tile = _round_up(-(-rows // nt), 16)
    return tile, nt, nt * tile


# ------------------- pointwise (1x1 conv + BN + SiLU) kernels -------------------

def _make_cv1_kernel(c):
    def kernel(x_ref, w_ref, b_ref, o1_ref, o2_ref):
        # one fused (tile, Cin) @ (Cin, 2c) dot; chunks sliced in VMEM
        x = x_ref[...].astype(MM_DTYPE)
        y = jnp.dot(x, w_ref[...], preferred_element_type=jnp.float32) + b_ref[...]
        y = _silu_f32(y)
        o1_ref[...] = y[:, :c].astype(o1_ref.dtype)
        o2_ref[...] = y[:, c:].astype(o2_ref.dtype)
    return kernel


def cv1_pointwise(x, w_fused, bias, c):
    """1x1 conv (BN folded) + SiLU, emitting the two c-channel chunks directly."""
    B, H, W, Cin = x.shape
    w2 = jnp.transpose(w_fused[:, :, 0, 0], (1, 0)).astype(MM_DTYPE)   # (Cin, 2c)
    b2 = bias.reshape(1, 2 * c).astype(jnp.float32)

    rows = B * H * W
    tile, nt, rows_p = _pointwise_tile(rows)
    xf = x.reshape(rows, Cin).astype(MM_DTYPE)
    if rows_p != rows:
        xf = jnp.pad(xf, ((0, rows_p - rows), (0, 0)))

    cap = _tpu_vmem_capacity()
    o1, o2 = pl.pallas_call(
        _make_cv1_kernel(c),
        out_shape=(jax.ShapeDtypeStruct((rows_p, c), ACT_DTYPE),
                   jax.ShapeDtypeStruct((rows_p, c), ACT_DTYPE)),
        grid_spec=pltpu.PrefetchScalarGridSpec(
            num_scalar_prefetch=0,
            grid=(nt,),
            in_specs=[
                pl.BlockSpec((tile, Cin), lambda i: (i, 0)),
                pl.BlockSpec((Cin, 2 * c), lambda i: (0, 0)),
                pl.BlockSpec((1, 2 * c), lambda i: (0, 0)),
            ],
            out_specs=[pl.BlockSpec((tile, c), lambda i: (i, 0)),
                       pl.BlockSpec((tile, c), lambda i: (i, 0))],
        ),
        compiler_params=pltpu.CompilerParams(
            dimension_semantics=("parallel",),
            vmem_limit_bytes=min(64 << 20, int(cap * 0.8))),
    )(xf, w2, b2)
    return (o1[:rows].reshape(B, H, W, c), o2[:rows].reshape(B, H, W, c))


def _make_cv2_kernel(m):
    def kernel(*refs):
        y_refs = refs[:m]
        w_ref, b_ref, o_ref = refs[m], refs[m + 1], refs[m + 2]
        # virtual channel-concat: one big-K (tile, m*c) @ (m*c, Cout) dot
        ycat = jnp.concatenate([y_refs[j][...].astype(MM_DTYPE) for j in range(m)],
                               axis=1)
        y = jnp.dot(ycat, w_ref[...], preferred_element_type=jnp.float32) + b_ref[...]
        o_ref[...] = _silu_f32(y).astype(o_ref.dtype)
    return kernel


def cv2_pointwise(chunks, w_fused, bias, out_dtype):
    """cv2 = 1x1 conv over the (virtual) concat of the chunk list (big-K in VMEM)."""
    B, H, W, c = chunks[0].shape
    m = len(chunks)
    Cout = w_fused.shape[0]
    w2 = jnp.transpose(w_fused[:, :, 0, 0], (1, 0)).astype(MM_DTYPE)   # (m*c, Cout)
    b2 = bias.reshape(1, Cout).astype(jnp.float32)

    rows = B * H * W
    tile, nt, rows_p = _pointwise_tile(rows)
    ys = []
    for y in chunks:
        yf = y.reshape(rows, c).astype(ACT_DTYPE)
        if rows_p != rows:
            yf = jnp.pad(yf, ((0, rows_p - rows), (0, 0)))
        ys.append(yf)

    cap = _tpu_vmem_capacity()
    in_specs = ([pl.BlockSpec((tile, c), lambda i: (i, 0)) for _ in range(m)]
                + [pl.BlockSpec((m * c, Cout), lambda i: (0, 0)),
                   pl.BlockSpec((1, Cout), lambda i: (0, 0))])
    out = pl.pallas_call(
        _make_cv2_kernel(m),
        out_shape=jax.ShapeDtypeStruct((rows_p, Cout), out_dtype),
        grid_spec=pltpu.PrefetchScalarGridSpec(
            num_scalar_prefetch=0,
            grid=(nt,),
            in_specs=in_specs,
            out_specs=pl.BlockSpec((tile, Cout), lambda i: (i, 0)),
        ),
        compiler_params=pltpu.CompilerParams(
            dimension_semantics=("parallel",),
            vmem_limit_bytes=min(64 << 20, int(cap * 0.8))),
    )(*ys, w2, b2)
    return out[:rows].reshape(B, H, W, Cout)


# --------------- fused Bottleneck (two 3x3 conv+BN+SiLU + shortcut) ---------------

def _strip_vmem_bytes(th, wp, w_out, c, per_tap):
    """Exact-ish accounting of the declared scratch + main in-kernel temporaries."""
    ab = jnp.dtype(ACT_DTYPE).itemsize
    mb = jnp.dtype(MM_DTYPE).itemsize
    xs = 2 * (th + 4) * wp * c * ab                      # input strip double buffer
    zb = (th + 2) * wp * c * mb                          # z scratch (W-padded)
    wts = 2 * 2 * 9 * c * c * mb                         # both conv weights x 2 bufs
    outb = 2 * th * w_out * c * ab                       # output block double buffer
    z_tmp = (th + 2) * w_out * c * 4                     # conv1 f32 result
    o_tmp = th * w_out * c * 4                           # conv2 f32 result
    if per_tap:
        tmp = 3 * (th + 2) * w_out * c * mb + (th + 2) * w_out * c * 4
    else:
        tmp = ((th + 2) + th) * w_out * 9 * c * mb       # im2col patch buffers
    return xs + zb + wts + outb + z_tmp + o_tmp + tmp


def _pick_strip_height(H, w_out, wp, c, per_tap, budget_bytes):
    """Largest divisor of H whose per-strip VMEM footprint fits the budget."""
    for th in range(H, 0, -1):
        if H % th != 0:
            continue
        need = int(1.25 * _strip_vmem_bytes(th, wp, w_out, c, per_tap)) + (1 << 20)
        if need <= budget_bytes:
            return th
    return 1


def _make_bottleneck_kernel(TH, W, Wp, C, H, shortcut, per_tap):
    TH4 = TH + 4

    def conv3x3(xpad, hout, w_ref, b_ref):
        # xpad: (hout+2, Wp, C) in MM_DTYPE (cols >= W+2 are never read).
        if per_tap:
            # large C: 9 accumulating matmuls, no materialized im2col buffer
            acc = jnp.zeros((hout * W, C), jnp.float32)
            for t in range(9):
                kh, kw = divmod(t, 3)
                tap = xpad[kh:kh + hout, kw:kw + W, :].reshape(hout * W, C)
                acc = acc + jnp.dot(tap, w_ref[t],
                                    preferred_element_type=jnp.float32)
            y = acc + b_ref[...]
        else:
            # small C: single big-K contraction (rows, 9C) @ (9C, C)
            taps = [xpad[kh:kh + hout, kw:kw + W, :].reshape(hout * W, C)
                    for kh in range(3) for kw in range(3)]
            patches = jnp.concatenate(taps, axis=1)
            y = jnp.dot(patches, w_ref[...].reshape(9 * C, C),
                        preferred_element_type=jnp.float32) + b_ref[...]
        return _silu_f32(y).reshape(hout, W, C)

    def kernel(xp_hbm, w1_ref, b1_ref, w2_ref, b2_ref, o_ref, xs, zbuf, sem):
        b = pl.program_id(0)
        s = pl.program_id(1)
        n_s = pl.num_programs(1)

        def fetch(row0, slot):
            pltpu.make_async_copy(xp_hbm.at[pl.ds(row0, TH4)],
                                  xs.at[slot], sem.at[slot]).start()

        @pl.when(s == 0)
        def _():
            fetch(b * (H + 4), 0)                              # prime slot 0

        slot = s % 2
        pltpu.make_async_copy(xp_hbm.at[pl.ds(b * (H + 4) + s * TH, TH4)],
                              xs.at[slot], sem.at[slot]).wait()

        @pl.when(s + 1 < n_s)
        def _():                                               # prefetch next strip
            fetch(b * (H + 4) + (s + 1) * TH, 1 - slot)

        xfull = xs[slot].astype(MM_DTYPE)                      # (TH+4, Wp, C)

        # conv1 -> z for rows [s*TH-1, s*TH+TH+1); kept entirely in VMEM
        z = conv3x3(xfull, TH + 2, w1_ref, b1_ref)             # (TH+2, W, C) f32
        zbuf[:, 1:W + 1, :] = z.astype(zbuf.dtype)

        # conv2 sees a zero-padded z: zero the W border columns every step (no
        # reliance on cross-step/cross-core scratch persistence) ...
        zbuf[:, 0:1, :] = jnp.zeros((TH + 2, 1, C), zbuf.dtype)
        zbuf[:, W + 1:, :] = jnp.zeros((TH + 2, Wp - W - 1, C), zbuf.dtype)

        # ... and zero the global H-boundary rows (z[-1] and z[H] are conv2
        # padding, NOT conv1 of the zero-padded input).
        @pl.when(s == 0)
        def _():
            zbuf[0:1, :, :] = jnp.zeros((1, Wp, C), zbuf.dtype)

        @pl.when(s == n_s - 1)
        def _():
            zbuf[TH + 1:TH + 2, :, :] = jnp.zeros((1, Wp, C), zbuf.dtype)

        # conv2 -> output rows [s*TH, s*TH+TH)
        out = conv3x3(zbuf[...], TH, w2_ref, b2_ref)           # (TH, W, C) f32
        if shortcut:
            out = out + xfull[2:2 + TH, 1:W + 1, :].astype(jnp.float32)
        o_ref[0] = out.astype(o_ref.dtype)

    return kernel


def bottleneck_fused(x, w1_fused, b1, w2_fused, b2, shortcut=False):
    """Fused Bottleneck: 3x3 conv+BN+SiLU -> 3x3 conv+BN+SiLU (+ residual)."""
    B, H, W, C = x.shape
    # weights in (kh*3+kw, cin, cout) order to match the tap/patch layout
    w1m = jnp.transpose(w1_fused, (2, 3, 1, 0)).reshape(9, C, C).astype(MM_DTYPE)
    w2m = jnp.transpose(w2_fused, (2, 3, 1, 0)).reshape(9, C, C).astype(MM_DTYPE)
    b1r = b1.reshape(1, C).astype(jnp.float32)
    b2r = b2.reshape(1, C).astype(jnp.float32)

    per_tap = C >= 128
    Wp = _round_up(W + 2, 8)                 # sublane-aligned padded row width
    cap = _tpu_vmem_capacity()
    TH = _pick_strip_height(H, W, Wp, C, per_tap, int(cap * 0.6))
    n_strips = H // TH

    # TODO(synk): write each bottleneck's output directly into a padded HBM
    # layout (or clamp halo DMAs in-kernel) to avoid this per-bottleneck
    # jnp.pad round trip through HBM.
    xp = jnp.pad(x.astype(ACT_DTYPE), ((0, 0), (2, 2), (1, Wp - W - 1), (0, 0)))
    xp = xp.reshape(B * (H + 4), Wp, C)

    kernel = _make_bottleneck_kernel(TH, W, Wp, C, H, shortcut, per_tap)
    return pl.pallas_call(
        kernel,
        out_shape=jax.ShapeDtypeStruct((B, H, W, C), ACT_DTYPE),
        grid_spec=pltpu.PrefetchScalarGridSpec(
            num_scalar_prefetch=0,
            grid=(B, n_strips),
            in_specs=[
                pl.BlockSpec(memory_space=pl.ANY),             # x stays in HBM
                pl.BlockSpec((9, C, C), lambda b, s: (0, 0, 0)),
                pl.BlockSpec((1, C), lambda b, s: (0, 0)),
                pl.BlockSpec((9, C, C), lambda b, s: (0, 0, 0)),
                pl.BlockSpec((1, C), lambda b, s: (0, 0)),
            ],
            out_specs=pl.BlockSpec((1, TH, W, C), lambda b, s: (b, s, 0, 0)),
            scratch_shapes=[
                pltpu.VMEM((2, TH + 4, Wp, C), ACT_DTYPE),     # strip double buffer
                pltpu.VMEM((TH + 2, Wp, C), MM_DTYPE),         # z scratch (W-padded)
                pltpu.SemaphoreType.DMA((2,)),
            ],
        ),
        compiler_params=pltpu.CompilerParams(
            # batch axis parallel -> v7x megacore; strips stay sequential
            dimension_semantics=("parallel", "arbitrary"),
            vmem_limit_bytes=int(cap * 0.8),
        ),
    )(xp, w1m, b1r, w2m, b2r)


# ------------------------- parameters & BN folding -------------------------

def _init_conv_params(key, c_in, c_out, k):
    ks = jax.random.split(key, 5)
    return dict(
        w=0.1 * jax.random.normal(ks[0], (c_out, c_in, k, k), jnp.float32),
        gamma=1.0 + 0.1 * jax.random.normal(ks[1], (c_out,), jnp.float32),
        beta=0.1 * jax.random.normal(ks[2], (c_out,), jnp.float32),
        mean=0.1 * jax.random.normal(ks[3], (c_out,), jnp.float32),
        var=0.5 + 0.25 * jax.random.uniform(ks[4], (c_out,), jnp.float32),
    )


def _fuse_bn(p):
    s = p["gamma"] / jnp.sqrt(p["var"] + BN_EPS)
    return p["w"] * s[:, None, None, None], p["beta"] - p["mean"] * s


def make_c2f_params(key, c1, c2, n=1, e=0.5):
    c = int(c2 * e)
    keys = jax.random.split(key, 2 + 2 * n)
    return {
        "c": c,
        "cv1": _init_conv_params(keys[0], c1, 2 * c, 1),
        "cv2": _init_conv_params(keys[1], (2 + n) * c, c2, 1),
        "m": [(_init_conv_params(keys[2 + 2 * i], c, c, 3),
               _init_conv_params(keys[3 + 2 * i], c, c, 3)) for i in range(n)],
    }


# ------------------------------ C2f forward ------------------------------

def c2f_forward_pallas(x_nhwc, params, shortcut=False):
    c = params["c"]
    out_dtype = x_nhwc.dtype
    w1, b1 = _fuse_bn(params["cv1"])
    y0, y1 = cv1_pointwise(x_nhwc, w1, b1, c)          # cv1 + chunk(2, dim=C)
    y = [y0, y1]
    for p_a, p_b in params["m"]:                       # fused Bottleneck blocks
        wa, ba = _fuse_bn(p_a)
        wb, bb = _fuse_bn(p_b)
        y.append(bottleneck_fused(y[-1], wa, ba, wb, bb, shortcut=shortcut))
    w2, b2 = _fuse_bn(params["cv2"])
    return cv2_pointwise(y, w2, b2, out_dtype)         # cat + cv2 (fused big-K)


# ------------------------- pure-JAX reference (check) -------------------------

def _conv_bn_silu_ref(x, p, pad):
    y = lax.conv_general_dilated(
        x, jnp.transpose(p["w"], (2, 3, 1, 0)),
        window_strides=(1, 1), padding=((pad, pad), (pad, pad)),
        dimension_numbers=("NHWC", "HWIO", "NHWC"),
        precision=lax.Precision.HIGHEST)
    y = (y - p["mean"]) / jnp.sqrt(p["var"] + BN_EPS) * p["gamma"] + p["beta"]
    return y * jax.nn.sigmoid(y)


def c2f_forward_ref(x_nhwc, params, shortcut=False):
    c = params["c"]
    t = _conv_bn_silu_ref(x_nhwc, params["cv1"], 0)
    y = [t[..., :c], t[..., c:]]
    for p_a, p_b in params["m"]:
        z = _conv_bn_silu_ref(y[-1], p_a, 1)
        z = _conv_bn_silu_ref(z, p_b, 1)
        if shortcut:
            z = y[-1] + z
        y.append(z)
    cat = jnp.concatenate(y, axis=-1)
    return _conv_bn_silu_ref(cat, params["cv2"], 0)


# ---------------------------------- main ----------------------------------

if __name__ == "__main__":
    B, C1, C2, H, W, N = 2, 4, 4, 16, 16, 1
    key = jax.random.PRNGKey(0)
    kx, kp = jax.random.split(key)

    x_nchw = jax.random.normal(kx, (B, C1, H, W), jnp.float32)   # PyTorch layout
    x_nhwc = jnp.transpose(x_nchw, (0, 2, 3, 1))                 # kernel layout

    params = make_c2f_params(kp, C1, C2, n=N)

    out = c2f_forward_pallas(x_nhwc, params, shortcut=False)
    out = jax.block_until_ready(out)
    assert out.shape == (B, H, W, C2)

    ref = c2f_forward_ref(x_nhwc, params, shortcut=False)
    # bf16 MXU operands / bf16 chunk storage (f32 accumulation) vs. f32 reference
    np.testing.assert_allclose(np.asarray(out, dtype=np.float32),
                               np.asarray(ref, dtype=np.float32),
                               rtol=2e-2, atol=2e-2)

    print("KERNEL_OK")
</pallas_src>

<mosaic_0001>
module attributes {stable_mosaic.version = 11 : i64} {
  func.func @kernel(%arg0: i32, %arg1: memref<512x4xbf16, #tpu.memory_space<vmem>>, %arg2: memref<4x4xbf16, #tpu.memory_space<vmem>>, %arg3: memref<1x4xf32, #tpu.memory_space<vmem>>, %arg4: memref<512x2xbf16, #tpu.memory_space<vmem>>, %arg5: memref<512x2xbf16, #tpu.memory_space<vmem>>) attributes {dimension_semantics = [#tpu.dimension_semantics<parallel>], iteration_bounds = array<i64: 1>, scalar_prefetch = 0 : i64, scratch_operands = 0 : i64, tpu.core_type = #tpu.core_type<tc>, window_params = [{transform_indices = @transform_0, window_bounds = array<i64: 512, 4>}, {pipeline_mode = #tpu.pipeline_mode<synchronous>, transform_indices = @transform_1, window_bounds = array<i64: 4, 4>}, {pipeline_mode = #tpu.pipeline_mode<synchronous>, transform_indices = @transform_2, window_bounds = array<i64: 1, 4>}, {transform_indices = @transform_3, window_bounds = array<i64: 512, 2>}, {transform_indices = @transform_4, window_bounds = array<i64: 512, 2>}]} {
    %c0 = arith.constant 0 : index
    %c0_0 = arith.constant 0 : index
    %0 = vector.load %arg1[%c0, %c0_0] : memref<512x4xbf16, #tpu.memory_space<vmem>>, vector<512x4xbf16>
    %c0_1 = arith.constant 0 : index
    %c0_2 = arith.constant 0 : index
    %1 = vector.load %arg2[%c0_1, %c0_2] : memref<4x4xbf16, #tpu.memory_space<vmem>>, vector<4x4xbf16>
    %cst = arith.constant dense<0.000000e+00> : vector<512x4xf32>
    %2 = tpu.matmul %0, %1, %cst {dimension_numbers = #tpu.dot_dimension_numbers<[1], [0], [0], [1], [0, 0, 1, 1], [], []>} : vector<512x4xbf16>, vector<4x4xbf16>, vector<512x4xf32> -> vector<512x4xf32>
    %c0_3 = arith.constant 0 : index
    %c0_4 = arith.constant 0 : index
    %3 = vector.load %arg3[%c0_3, %c0_4] : memref<1x4xf32, #tpu.memory_space<vmem>>, vector<1x4xf32>
    %4 = vector.broadcast %3 : vector<1x4xf32> to vector<512x4xf32>
    %5 = arith.addf %2, %4 : vector<512x4xf32>
    %cst_5 = arith.constant 0.000000e+00 : f32
    %6 = vector.broadcast %cst_5 : f32 to vector<512x4xf32>
    %7 = arith.subf %6, %5 : vector<512x4xf32>
    %8 = math.exp %7 : vector<512x4xf32>
    %cst_6 = arith.constant 1.000000e+00 : f32
    %9 = vector.broadcast %cst_6 : f32 to vector<512x4xf32>
    %10 = arith.addf %9, %8 : vector<512x4xf32>
    %11 = tpu.reciprocal %10 {approx = true} : vector<512x4xf32> -> vector<512x4xf32>
    %12 = arith.mulf %5, %11 : vector<512x4xf32>
    %13 = vector.extract_strided_slice %12 {offsets = [0, 0], sizes = [512, 2], strides = [1, 1]} : vector<512x4xf32> to vector<512x2xf32>
    %14 = arith.truncf %13 : vector<512x2xf32> to vector<512x2xbf16>
    %c0_7 = arith.constant 0 : index
    %c0_8 = arith.constant 0 : index
    %15 = vector.load %arg4[%c0_7, %c0_8] : memref<512x2xbf16, #tpu.memory_space<vmem>>, vector<512x2xbf16>
    tpu.vector_store %arg4[%c0_7, %c0_8], %14 {strides = array<i32>} : memref<512x2xbf16, #tpu.memory_space<vmem>>, vector<512x2xbf16>,
    %16 = vector.extract_strided_slice %12 {offsets = [0, 2], sizes = [512, 2], strides = [1, 1]} : vector<512x4xf32> to vector<512x2xf32>
    %17 = arith.truncf %16 : vector<512x2xf32> to vector<512x2xbf16>
    %c0_9 = arith.constant 0 : index
    %c0_10 = arith.constant 0 : index
    %18 = vector.load %arg5[%c0_9, %c0_10] : memref<512x2xbf16, #tpu.memory_space<vmem>>, vector<512x2xbf16>
    tpu.vector_store %arg5[%c0_9, %c0_10], %17 {strides = array<i32>} : memref<512x2xbf16, #tpu.memory_space<vmem>>, vector<512x2xbf16>,
    return
  }
  func.func @transform_0(%arg0: i32) -> (i32, i32) {
    %c0_i32 = arith.constant 0 : i32
    %c0_i32_0 = arith.constant 0 : i32
    return %arg0, %c0_i32 : i32, i32
  }
  func.func @transform_1(%arg0: i32) -> (i32, i32) {
    %c0_i32 = arith.constant 0 : i32
    %c0_i32_0 = arith.constant 0 : i32
    %c0_i32_1 = arith.constant 0 : i32
    return %c0_i32, %c0_i32_0 : i32, i32
  }
  func.func @transform_2(%arg0: i32) -> (i32, i32) {
    %c0_i32 = arith.constant 0 : i32
    %c0_i32_0 = arith.constant 0 : i32
    %c0_i32_1 = arith.constant 0 : i32
    return %c0_i32, %c0_i32_0 : i32, i32
  }
  func.func @transform_3(%arg0: i32) -> (i32, i32) {
    %c0_i32 = arith.constant 0 : i32
    %c0_i32_0 = arith.constant 0 : i32
    return %arg0, %c0_i32 : i32, i32
  }
  func.func @transform_4(%arg0: i32) -> (i32, i32) {
    %c0_i32 = arith.constant 0 : i32
    %c0_i32_0 = arith.constant 0 : i32
    return %arg0, %c0_i32 : i32, i32
  }
}

</mosaic_0001>

<bundles_post_ra>
// kernel: tpu_custom_call.1
= control target key start
LH: loop header
LB: loop body
LE: loop exit
PB: predicated region body
PF: predicated region fallthrough
CT: control target
= control target key end

     0   :  { %vm346_vm0 = vcmask 1041408   ;;  %vm249_vm1 = vcmask 31744   ;;  %vm1279_vm2 = vcmask 11264   ;;  %s3555_s1 = inlined_call_operand.vmem [shape: bf16[4,4], index: 1, kind: input, shape index: {}]   ;;  %s3556_s0 = inlined_call_operand.vmem [shape: bf16[512,4], index: 0, kind: input, shape index: {}]   ;;  %s3557_s2 = inlined_call_operand.vmem [shape: f32[1,4], index: 2, kind: input, shape index: {}]   ;;  %s3558_s3 = inlined_call_operand.vmem [shape: bf16[512,2], index: 3, kind: output, shape index: {0}]   ;;  %s3559_s4 = inlined_call_operand.vmem [shape: bf16[512,2], index: 4, kind: output, shape index: {1}]  }
   0x1   :  { %v81_v0 = vld [vmem:[%s3555_s1] sm:$0x3]  ;;  %v1907_v4 = vld [vmem:[%s3556_s0 + $0x8] sm:$0xff]   ;;  %v1909_v6 = vld [vmem:[%s3556_s0 + $0x10] sm:$0xff]  }
   0x2   :  { %1902 = vmatprep.subr.msk.bf16.mxu0 %vm346_vm0, %v81_v0  ;;  %1903 = vmatprep.subr.msk.bf16.mxu1 %vm346_vm0, %v81_v0  ;;  %v348_v1 = vsel %vm346_vm0, %v81_v0, 0  ;;  %v1905_v2 = vld [vmem:[%s3556_s0] sm:$0xff]   ;;  %v1908_v5 = vld [vmem:[%s3556_s0 + $0x88] sm:$0xff]   ;;  %v1910_v7 = vld [vmem:[%s3556_s0 + $0x90] sm:$0xff]  }
   0x3   :  { %1835 = vmatpush3.bf16.msra.mxu0 %v348_v1  ;;  %1901 = vmatpush3.bf16.msra.mxu1 %v348_v1  ;;  %v1906_v3 = vld [vmem:[%s3556_s0 + $0x80] sm:$0xff]   ;;  %v1911_v8 = vld [vmem:[%s3556_s0 + $0x18] sm:$0xff]   ;;  %v1915_v12 = vld [vmem:[%s3556_s0 + $0x28] sm:$0xff]  }
   0x4   :  { %1836 = vmatprep.mubr.msk.bf16.mxu0 %vm249_vm1, %v1905_v2  ;;  %1868 = vmatprep.mubr.msk.bf16.mxu1 %vm249_vm1, %v1906_v3  ;;  %v1912_v9 = vld [vmem:[%s3556_s0 + $0x98] sm:$0xff]   ;;  %v1913_v10 = vld [vmem:[%s3556_s0 + $0x20] sm:$0xff]   ;;  %v1916_v13 = vld [vmem:[%s3556_s0 + $0xa8] sm:$0xff]  }
   0x5   :  { %v1914_v11 = vld [vmem:[%s3556_s0 + $0xa0] sm:$0xff]   ;;  %v1917_v14 = vld [vmem:[%s3556_s0 + $0x30] sm:$0xff]   ;;  %v1919_v16 = vld [vmem:[%s3556_s0 + $0x38] sm:$0xff]  }
   0x6   :  { %1837 = vmatmul.mubr.msk.bf16.vlgmr.msra.gmra.mxu0 %vm249_vm1, %v1907_v4  ;;  %1869 = vmatmul.mubr.msk.bf16.vlgmr.msra.gmra.mxu1 %vm249_vm1, %v1908_v5  ;;  %v1918_v15 = vld [vmem:[%s3556_s0 + $0xb0] sm:$0xff]   ;;  %v1920_v17 = vld [vmem:[%s3556_s0 + $0xb8] sm:$0xff]   ;;  %v1921_v18 = vld [vmem:[%s3556_s0 + $0x40] sm:$0xff]  }
   0x7   :  { %1840 = vmatprep.mubr.msk.bf16.mxu0 %vm249_vm1, %v1909_v6  ;;  %1872 = vmatprep.mubr.msk.bf16.mxu1 %vm249_vm1, %v1910_v7  ;;  %v1922_v19 = vld [vmem:[%s3556_s0 + $0xc0] sm:$0xff]   ;;  %v1923_v20 = vld [vmem:[%s3556_s0 + $0x48] sm:$0xff]   ;;  %v1925_v22 = vld [vmem:[%s3556_s0 + $0x50] sm:$0xff]  }
   0x8   :  { %v1924_v21 = vld [vmem:[%s3556_s0 + $0xc8] sm:$0xff]   ;;  %v1926_v23 = vld [vmem:[%s3556_s0 + $0xd0] sm:$0xff]   ;;  %v1927_v24 = vld [vmem:[%s3556_s0 + $0x58] sm:$0xff]  }
   0x9   :  { %v1928_v25 = vld [vmem:[%s3556_s0 + $0xd8] sm:$0xff]   ;;  %v1929_v26 = vld [vmem:[%s3556_s0 + $0x60] sm:$0xff]   ;;  %v1930_v28 = vld [vmem:[%s3556_s0 + $0x68] sm:$0xff]  }
   0xa   :  { %v1931_v27 = vld [vmem:[%s3556_s0 + $0xe0] sm:$0xff]   ;;  %v1932_v29 = vld [vmem:[%s3556_s0 + $0xe8] sm:$0xff]   ;;  %v1933_v30 = vld [vmem:[%s3556_s0 + $0x70] sm:$0xff]  }
   0xb   :  { %v1935_v31 = vld [vmem:[%s3556_s0 + $0xf0] sm:$0xff]   ;;  %v1934_v32 = vld [vmem:[%s3556_s0 + $0x78] sm:$0xff]   ;;  %v2354_v34 = vld [vmem:[%s3557_s2] ss:$0 sm:$0xff] }
   0xc   :  { %v1936_v33 = vld [vmem:[%s3556_s0 + $0xf8] sm:$0xff]   ;;  %s2194_s0 = smov 126  }
   0xe   :  { %1841 = vmatmul.mubr.msk.bf16.gmra.mxu0 %vm249_vm1, %v1911_v8  ;;  %1873 = vmatmul.mubr.msk.bf16.gmra.mxu1 %vm249_vm1, %v1912_v9 }
   0xf   :  { %1844 = vmatprep.mubr.msk.bf16.mxu0 %vm249_vm1, %v1913_v10  ;;  %1876 = vmatprep.mubr.msk.bf16.mxu1 %vm249_vm1, %v1914_v11 }
  0x16   :  { %1845 = vmatmul.mubr.msk.bf16.gmra.mxu0 %vm249_vm1, %v1915_v12  ;;  %1877 = vmatmul.mubr.msk.bf16.gmra.mxu1 %vm249_vm1, %v1916_v13 }
  0x17   :  { %1848 = vmatprep.mubr.msk.bf16.mxu0 %vm249_vm1, %v1917_v14  ;;  %1880 = vmatprep.mubr.msk.bf16.mxu1 %vm249_vm1, %v1918_v15 }
  0x1e   :  { %1849 = vmatmul.mubr.msk.bf16.gmra.mxu0 %vm249_vm1, %v1919_v16  ;;  %1881 = vmatmul.mubr.msk.bf16.gmra.mxu1 %vm249_vm1, %v1920_v17 }
  0x1f   :  { %1852 = vmatprep.mubr.msk.bf16.mxu0 %vm249_vm1, %v1921_v18  ;;  %1884 = vmatprep.mubr.msk.bf16.mxu1 %vm249_vm1, %v1922_v19 }
  0x26   :  { %1853 = vmatmul.mubr.msk.bf16.gmra.mxu0 %vm249_vm1, %v1923_v20  ;;  %1885 = vmatmul.mubr.msk.bf16.gmra.mxu1 %vm249_vm1, %v1924_v21 }
  0x27   :  { %1856 = vmatprep.mubr.msk.bf16.mxu0 %vm249_vm1, %v1925_v22  ;;  %1888 = vmatprep.mubr.msk.bf16.mxu1 %vm249_vm1, %v1926_v23 }
  0x2e   :  { %1857 = vmatmul.mubr.msk.bf16.gmra.mxu0 %vm249_vm1, %v1927_v24  ;;  %1889 = vmatmul.mubr.msk.bf16.gmra.mxu1 %vm249_vm1, %v1928_v25 }
  0x2f   :  { %1860 = vmatprep.mubr.msk.bf16.mxu0 %vm249_vm1, %v1929_v26  ;;  %1892 = vmatprep.mubr.msk.bf16.mxu1 %vm249_vm1, %v1931_v27 }
  0x36   :  { %1861 = vmatmul.mubr.msk.bf16.gmra.mxu0 %vm249_vm1, %v1930_v28  ;;  %1893 = vmatmul.mubr.msk.bf16.gmra.mxu1 %vm249_vm1, %v1932_v29 }
  0x37   :  { %1864 = vmatprep.mubr.msk.bf16.mxu0 %vm249_vm1, %v1933_v30  ;;  %1896 = vmatprep.mubr.msk.bf16.mxu1 %vm249_vm1, %v1935_v31 }
  0x3e   :  { %1865 = vmatmul.mubr.msk.bf16.gmra.mxu0 %vm249_vm1, %v1934_v32  ;;  %1897 = vmatmul.mubr.msk.bf16.gmra.mxu1 %vm249_vm1, %v1936_v33 }
  0xc6   :  { %v1838_v35 = vpop.f32.mrf.mxu0  ;;  %v1870_v37 = vpop.f32.mrf.mxu1 }
  0xc7   :  { %v2357_v36 = vadd.f32 %v1838_v35, %v2354_v34  ;;  %v2360_v38 = vadd.f32 %v1870_v37, %v2354_v34 }
  0xc8   :  { %v384_v39 = vpop.f32.mrf.mxu0  ;;  %v512_v42 = vpop.f32.mrf.mxu1 }
  0xc9   :  { %v641_v40 = vsub.f32 0.0, %v2357_v36  ;;  %v2364_v41 = vadd.f32 %v2354_v34, %v384_v39  ;;  %v673_v43 = vsub.f32 0.0, %v2360_v38  ;;  %v2368_v44 = vadd.f32 %v2354_v34, %v512_v42 }
  0xca   :  { %v1839_v45 = vpop.f32.mrf.mxu0  ;;  %v1871_v49 = vpop.f32.mrf.mxu1 }
  0xcb   :  { %v707_v46 = vmul.f32 1.442695, %v641_v40  ;;  %v639_v47 = vsub.f32 0.0, %v2364_v41  ;;  %v2372_v48 = vadd.f32 %v1839_v45, %v2354_v34  ;;  %v771_v50 = vmul.f32 1.442695, %v673_v43 }
  0xcc   :  { %v671_v51 = vsub.f32 0.0, %v2368_v44  ;;  %v2376_v52 = vadd.f32 %v1871_v49, %v2354_v34  ;;  %v387_v53 = vpop.f32.mrf.mxu0  ;;  %v515_v57 = vpop.f32.mrf.mxu1 }
  0xcd   :  { %1937 = vpow2.f32 %v707_v46  ;;  %v703_v54 = vmul.f32 1.442695, %v639_v47  ;;  %v642_v55 = vsub.f32 0.0, %v2372_v48  ;;  %v2380_v56 = vadd.f32 %v2354_v34, %v387_v53 }
  0xce   :  { %1939 = vpow2.f32 %v771_v50  ;;  %v767_v58 = vmul.f32 1.442695, %v671_v51  ;;  %v674_v59 = vsub.f32 0.0, %v2376_v52  ;;  %v2384_v60 = vadd.f32 %v2354_v34, %v515_v57  ;;  %v1842_v61 = vpop.f32.mrf.mxu0  ;;  %v1874_v1 = vpop.f32.mrf.mxu1 }
  0xcf   :  { %1941 = vpow2.f32 %v703_v54  ;;  %v709_v62 = vmul.f32 1.442695, %v642_v55  ;;  %v640_v63 = vsub.f32 0.0, %v2380_v56  ;;  %v2388_v0 = vadd.f32 %v1842_v61, %v2354_v34 }
  0xd0   :  { %1943 = vpow2.f32 %v767_v58  ;;  %v773_v2 = vmul.f32 1.442695, %v674_v59  ;;  %v672_v3 = vsub.f32 0.0, %v2384_v60  ;;  %v2392_v4 = vadd.f32 %v1874_v1, %v2354_v34  ;;  %v400_v5 = vpop.f32.mrf.mxu0  ;;  %v528_v9 = vpop.f32.mrf.mxu1 }
  0xd1   :  { %1945 = vpow2.f32 %v709_v62  ;;  %v705_v6 = vmul.f32 1.442695, %v640_v63  ;;  %v645_v7 = vsub.f32 0.0, %v2388_v0  ;;  %v2396_v8 = vadd.f32 %v2354_v34, %v400_v5 }
  0xd2   :  { %1947 = vpow2.f32 %v773_v2  ;;  %v769_v10 = vmul.f32 1.442695, %v672_v3  ;;  %v677_v11 = vsub.f32 0.0, %v2392_v4  ;;  %v2400_v12 = vadd.f32 %v2354_v34, %v528_v9  ;;  %v1843_v13 = vpop.f32.mrf.mxu0  ;;  %v1875_v17 = vpop.f32.mrf.mxu1 }
  0xd3   :  { %1949 = vpow2.f32 %v705_v6  ;;  %v715_v14 = vmul.f32 1.442695, %v645_v7  ;;  %v643_v15 = vsub.f32 0.0, %v2396_v8  ;;  %v2404_v16 = vadd.f32 %v1843_v13, %v2354_v34 }
  0xd4   :  { %1951 = vpow2.f32 %v769_v10  ;;  %v779_v18 = vmul.f32 1.442695, %v677_v11  ;;  %v675_v19 = vsub.f32 0.0, %v2400_v12  ;;  %v2408_v20 = vadd.f32 %v1875_v17, %v2354_v34  ;;  %v403_v21 = vpop.f32.mrf.mxu0  ;;  %v531_v25 = vpop.f32.mrf.mxu1 }
  0xd5   :  { %1953 = vpow2.f32 %v715_v14  ;;  %v711_v22 = vmul.f32 1.442695, %v643_v15  ;;  %v646_v23 = vsub.f32 0.0, %v2404_v16  ;;  %v2412_v24 = vadd.f32 %v2354_v34, %v403_v21 }
  0xd6   :  { %1955 = vpow2.f32 %v779_v18  ;;  %v775_v26 = vmul.f32 1.442695, %v675_v19  ;;  %v678_v27 = vsub.f32 0.0, %v2408_v20  ;;  %v2416_v28 = vadd.f32 %v2354_v34, %v531_v25  ;;  %v1846_v29 = vpop.f32.mrf.mxu0  ;;  %v1878_v33 = vpop.f32.mrf.mxu1 }
  0xd7   :  { %1957 = vpow2.f32 %v711_v22  ;;  %v717_v30 = vmul.f32 1.442695, %v646_v23  ;;  %v644_v31 = vsub.f32 0.0, %v2412_v24  ;;  %v2420_v32 = vadd.f32 %v1846_v29, %v2354_v34 }
  0xd8   :  { %1959 = vpow2.f32 %v775_v26  ;;  %v781_v35 = vmul.f32 1.442695, %v678_v27  ;;  %v676_v37 = vsub.f32 0.0, %v2416_v28  ;;  %v2424_v39 = vadd.f32 %v1878_v33, %v2354_v34  ;;  %v416_v40 = vpop.f32.mrf.mxu0  ;;  %v544_v45 = vpop.f32.mrf.mxu1 }
  0xd9   :  { %1961 = vpow2.f32 %v717_v30  ;;  %v713_v42 = vmul.f32 1.442695, %v644_v31  ;;  %v2427_v43 = vadd.f32 %v2354_v34, %v416_v40  ;;  %v2430_v49 = vadd.f32 %v2354_v34, %v544_v45 }
  0xda   :  { %v1938_v46 = vpop.eup %1937  ;;  %1963 = vpow2.f32 %v781_v35  ;;  %v777_v47 = vmul.f32 1.442695, %v676_v37  ;;  %v1847_v50 = vpop.f32.mrf.mxu0  ;;  %v649_v54 = vsub.f32 0.0, %v2420_v32  ;;  %v681_v59 = vsub.f32 0.0, %v2424_v39 }
  0xdb   :  { %v1940_v51 = vpop.eup %1939  ;;  %v833_v53 = vadd.f32 1.0, %v1938_v46  ;;  %1965 = vpow2.f32 %v713_v42  ;;  %v1879_v55 = vpop.f32.mrf.mxu1  ;;  %v647_v1 = vsub.f32 0.0, %v2427_v43  ;;  %v2436_v2 = vadd.f32 %v1847_v50, %v2354_v34 }
  0xdc   :  { %v1942_v57 = vpop.eup %1941  ;;  %v865_v58 = vadd.f32 1.0, %v1940_v51  ;;  %1967 = vpow2.f32 %v777_v47  ;;  %v419_v61 = vpop.f32.mrf.mxu0  ;;  %v679_v7 = vsub.f32 0.0, %v2430_v49  ;;  %v2440_v9 = vadd.f32 %v1879_v55, %v2354_v34 }
  0xdd   :  { %v1944_v62 = vpop.eup %1943  ;;  %1969 = vrcp.f32 %v833_v53  ;;  %v831_v63 = vadd.f32 1.0, %v1942_v57  ;;  %v547_v3 = vpop.f32.mrf.mxu1  ;;  %v2442_v14 = vmul.f32 1.442695, %v649_v54  ;;  %v650_v15 = vsub.f32 0.0, %v2436_v2 }
  0xde   :  { %v1946_v5 = vpop.eup %1945  ;;  %1971 = vrcp.f32 %v865_v58  ;;  %v863_v6 = vadd.f32 1.0, %v1944_v62  ;;  %v1850_v10 = vpop.f32.mrf.mxu0  ;;  %v2445_v21 = vmul.f32 1.442695, %v681_v59  ;;  %v2448_v22 = vadd.f32 %v2354_v34, %v419_v61 }
  0xdf   :  { %v1948_v11 = vpop.eup %1947  ;;  %1973 = vrcp.f32 %v831_v63  ;;  %v834_v13 = vadd.f32 1.0, %v1946_v5  ;;  %v1882_v17 = vpop.f32.mrf.mxu1  ;;  %v2450_v27 = vmul.f32 1.442695, %v647_v1  ;;  %v682_v29 = vsub.f32 0.0, %v2440_v9 }
  0xe0   :  { %v1950_v18 = vpop.eup %1949  ;;  %1975 = vrcp.f32 %v863_v6  ;;  %v866_v19 = vadd.f32 1.0, %v1948_v11  ;;  %v432_v23 = vpop.f32.mrf.mxu0  ;;  %v2453_v35 = vmul.f32 1.442695, %v679_v7  ;;  %v2456_v37 = vadd.f32 %v2354_v34, %v547_v3 }
  0xe1   :  { %v1952_v25 = vpop.eup %1951  ;;  %1977 = vrcp.f32 %v834_v13  ;;  %v832_v26 = vadd.f32 1.0, %v1950_v18  ;;  %v560_v30 = vpop.f32.mrf.mxu1  ;;  %v2458_v45 = vmul.f32 1.442695, %v650_v15  ;;  %v2461_v46 = vadd.f32 %v1850_v10, %v2354_v34 }
  0xe2   :  { %v1954_v31 = vpop.eup %1953  ;;  %1979 = vrcp.f32 %v866_v19  ;;  %v864_v33 = vadd.f32 1.0, %v1952_v25  ;;  %v1851_v47 = vpop.f32.mrf.mxu0  ;;  %v648_v54 = vsub.f32 0.0, %v2448_v22  ;;  %v2465_v55 = vadd.f32 %v1882_v17, %v2354_v34 }
  0xe3   :  { %v1956_v40 = vpop.eup %1955  ;;  %1981 = vrcp.f32 %v832_v26  ;;  %v837_v42 = vadd.f32 1.0, %v1954_v31  ;;  %v1883_v50 = vpop.f32.mrf.mxu1  ;;  %v2467_v59 = vmul.f32 1.442695, %v682_v29  ;;  %v2470_v61 = vadd.f32 %v2354_v34, %v432_v23 }
  0xe4   :  { %v1958_v51 = vpop.eup %1957  ;;  %1983 = vrcp.f32 %v864_v33  ;;  %v869_v53 = vadd.f32 1.0, %v1956_v40  ;;  %v680_v1 = vsub.f32 0.0, %v2456_v37  ;;  %v2474_v3 = vadd.f32 %v2354_v34, %v560_v30  ;;  %v435_v11 = vpop.f32.mrf.mxu0 }
  0xe5   :  { %v1960_v57 = vpop.eup %1959  ;;  %1985 = vrcp.f32 %v837_v42  ;;  %v835_v58 = vadd.f32 1.0, %v1958_v51  ;;  %v653_v7 = vsub.f32 0.0, %v2461_v46  ;;  %v685_v10 = vsub.f32 0.0, %v2465_v55  ;;  %v563_v13 = vpop.f32.mrf.mxu1 }
  0xe6   :  { %v1962_v62 = vpop.eup %1961  ;;  %1987 = vrcp.f32 %v869_v53  ;;  %v867_v63 = vadd.f32 1.0, %v1960_v57  ;;  %v651_v18 = vsub.f32 0.0, %v2470_v61  ;;  %v683_v19 = vsub.f32 0.0, %v2474_v3 }
  0xe7   :  { %v1964_v5 = vpop.eup %1963  ;;  %1989 = vrcp.f32 %v835_v58  ;;  %v838_v6 = vadd.f32 1.0, %v1962_v62  ;;  %v721_v26 = vmul.f32 1.442695, %v648_v54  ;;  %v2481_v29 = vadd.f32 %v1851_v47, %v2354_v34  ;;  %v1854_v54 = vpop.f32.mrf.mxu0 }
  0xe8   :  { %v1966_v15 = vpop.eup %1965  ;;  %1991 = vrcp.f32 %v867_v63  ;;  %v870_v17 = vadd.f32 1.0, %v1964_v5  ;;  %v785_v33 = vmul.f32 1.442695, %v680_v1  ;;  %v2486_v40 = vadd.f32 %v1883_v50, %v2354_v34  ;;  %v1886_v47 = vpop.f32.mrf.mxu1 }
  0xe9   :  { %v1968_v23 = vpop.eup %1967  ;;  %1993 = vrcp.f32 %v838_v6  ;;  %v836_v25 = vadd.f32 1.0, %v1966_v15  ;;  %v731_v51 = vmul.f32 1.442695, %v653_v7  ;;  %v2490_v53 = vmul.f32 1.442695, %v685_v10 }
  0xea   :  { %v2483_v30 = vpop.eup %1969  ;;  %1995 = vrcp.f32 %v870_v17  ;;  %v868_v31 = vadd.f32 1.0, %v1968_v23  ;;  %v2493_v57 = vadd.f32 %v2354_v34, %v435_v11  ;;  %v2495_v62 = vmul.f32 1.442695, %v651_v18 }
  0xeb   :  { %v2488_v42 = vpop.eup %1971  ;;  %1997 = vrcp.f32 %v836_v25  ;;  %v2497_v63 = vmul.f32 1.442695, %v683_v19  ;;  %v2500_v50 = vadd.f32 %v2354_v34, %v563_v13  ;;  %v654_v6 = vsub.f32 0.0, %v2481_v29  ;;  %v448_v19 = vpop.f32.mrf.mxu0 }
  0xec   :  { %v1974_v58 = vpop.eup %1973  ;;  %1999 = vrcp.f32 %v868_v31  ;;  %v686_v7 = vsub.f32 0.0, %v2486_v40  ;;  %v2509_v15 = vadd.f32 %v1854_v54, %v2354_v34  ;;  %v2512_v13 = vadd.f32 %v1886_v47, %v2354_v34 }
  0xed   :  { %v1976_v1 = vpop.eup %1975  ;;  %v959_v5 = vmul.f32 %v1974_v58, %v2364_v41  ;;  %2001 = vpow2.f32 %v2442_v14  ;;  %v652_v14 = vsub.f32 0.0, %v2493_v57  ;;  %v684_v25 = vsub.f32 0.0, %v2500_v50 }
  0xee   :  { %v1978_v10 = vpop.eup %1977  ;;  %v991_v11 = vmul.f32 %v1976_v1, %v2368_v44  ;;  %2003 = vpow2.f32 %v2445_v21  ;;  %3569 = vst [vmem:[#allocation2_spill] sm:$0xff] %v2512_v13  ;;  %v733_v54 = vmul.f32 1.442695, %v654_v6  ;;  %v797_v58 = vmul.f32 1.442695, %v686_v7  ;;  %v576_v6 = vpop.f32.mrf.mxu1 }
  0xef   :  { %v1980_v17 = vpop.eup %1979  ;;  %v2514_v18 = vpack.c.bf16 %v959_v5, %v959_v5  ;;  %v962_v41 = vmul.f32 %v1978_v10, %v2372_v48  ;;  %2005 = vpow2.f32 %v2450_v27  ;;  %v729_v5 = vmul.f32 1.442695, %v652_v14  ;;  %v1855_v10 = vpop.f32.mrf.mxu0 }
  0xf0   :  { %v1982_v23 = vpop.eup %1981  ;;  %v2519_v44 = vpack.c.bf16 %v991_v11, %v991_v11  ;;  %v994_v21 = vmul.f32 %v1980_v17, %v2376_v52  ;;  %2007 = vpow2.f32 %v2453_v35  ;;  %v793_v7 = vmul.f32 1.442695, %v684_v25 }
  0xf1   :  { %v1984_v31 = vpop.eup %1983  ;;  %1280 = vst.msk [vmem:[%s3558_s3] sm:$0xf] %vm1279_vm2, %v2514_v18  ;;  %v2529_v48 = vpack.c.bf16 %v962_v41, %v962_v41  ;;  %v960_v27 = vmul.f32 %v1982_v23, %v2380_v56  ;;  %2009 = vpow2.f32 %v2458_v45  ;;  %v2567_v41 = vadd.f32 %v2354_v34, %v448_v19 }
  0xf2   :  { %v1986_v47 = vpop.eup %1985  ;;  %1312 = vst.msk [vmem:[%s3558_s3 + $0x80] sm:$0xf] %vm1279_vm2, %v2519_v44  ;;  %v2538_v52 = vpack.c.bf16 %v994_v21, %v994_v21  ;;  %v992_v35 = vmul.f32 %v1984_v31, %v2384_v60  ;;  %2011 = vpow2.f32 %v2467_v59  ;;  %v2579_v23 = vadd.f32 %v2354_v34, %v576_v6  ;;  %v1887_v21 = vpop.f32.mrf.mxu1 }
  0xf3   :  { %v1988_v1 = vpop.eup %1987  ;;  %1283 = vst.msk [vmem:[%s3558_s3 + $0xc] sm:$0xf] %vm1279_vm2, %v2529_v48  ;;  %v2547_v56 = vpack.c.bf16 %v960_v27, %v960_v27  ;;  %v965_v45 = vmul.f32 %v1986_v47, %v2388_v0  ;;  %2013 = vpow2.f32 %v721_v26  ;;  %3570 = vst [vmem:[#allocation3_spill] sm:$0xff] %v2567_v41 }
  0xf4   :  { %v1990_v11 = vpop.eup %1989  ;;  %1315 = vst.msk [vmem:[%s3558_s3 + $0x8c] sm:$0xf] %vm1279_vm2, %v2538_v52  ;;  %v2555_v60 = vpack.c.bf16 %v992_v35, %v992_v35  ;;  %v997_v59 = vmul.f32 %v1988_v1, %v2392_v4  ;;  %2015 = vpow2.f32 %v785_v33  ;;  %3571 = vst [vmem:[#allocation4_spill] sm:$0xff] %v2579_v23  ;;  %v655_v1 = vsub.f32 0.0, %v2567_v41 }
  0xf5   :  { %v1992_v17 = vpop.eup %1991  ;;  %1281 = vst.msk [vmem:[%s3558_s3 + $0x4] sm:$0xf] %vm1279_vm2, %v2547_v56  ;;  %v2563_v0 = vpack.c.bf16 %v965_v45, %v965_v45  ;;  %v963_v26 = vmul.f32 %v1990_v11, %v2396_v8  ;;  %2017 = vpow2.f32 %v731_v51  ;;  %v687_v6 = vsub.f32 0.0, %v2579_v23 }
  0xf6   :  { %v1994_v14 = vpop.eup %1993  ;;  %1313 = vst.msk [vmem:[%s3558_s3 + $0x84] sm:$0xf] %vm1279_vm2, %v2555_v60  ;;  %v2574_v4 = vpack.c.bf16 %v997_v59, %v997_v59  ;;  %v995_v33 = vmul.f32 %v1992_v17, %v2400_v12  ;;  %2019 = vpow2.f32 %v2490_v53  ;;  %v657_v12 = vsub.f32 0.0, %v2509_v15  ;;  %v451_v53 = vpop.f32.mrf.mxu0 }
  0xf7   :  { %v1996_v8 = vpop.eup %1995  ;;  %1286 = vst.msk [vmem:[%s3558_s3 + $0x18] sm:$0xf] %vm1279_vm2, %v2563_v0  ;;  %v2586_v51 = vpack.c.bf16 %v963_v26, %v963_v26  ;;  %v966_v19 = vmul.f32 %v1994_v14, %v2404_v16  ;;  %2021 = vpow2.f32 %v2495_v62  ;;  %v689_v16 = vsub.f32 0.0, %v2512_v13  ;;  %v579_v17 = vpop.f32.mrf.mxu1 }
  0xf8   :  { %v1998_v25 = vpop.eup %1997  ;;  %1318 = vst.msk [vmem:[%s3558_s3 + $0x98] sm:$0xf] %vm1279_vm2, %v2574_v4  ;;  %v2596_v31 = vpack.c.bf16 %v995_v33, %v995_v33  ;;  %v998_v27 = vmul.f32 %v1996_v8, %v2408_v20  ;;  %2023 = vpow2.f32 %v2497_v63  ;;  %v2627_v59 = vadd.f32 %v1855_v10, %v2354_v34  ;;  %v1858_v26 = vpop.f32.mrf.mxu0 }
  0xf9   :  { %v2000_v62 = vpop.eup %1999  ;;  %1284 = vst.msk [vmem:[%s3558_s3 + $0x10] sm:$0xf] %vm1279_vm2, %v2586_v51  ;;  %v2606_v47 = vpack.c.bf16 %v966_v19, %v966_v19  ;;  %v964_v35 = vmul.f32 %v1998_v25, %v2412_v24  ;;  %2025 = vpow2.f32 %v733_v54  ;;  %v2637_v33 = vadd.f32 %v1887_v21, %v2354_v34 }
  0xfa   :  { %v2002_v45 = vpop.eup %2001  ;;  %1316 = vst.msk [vmem:[%s3558_s3 + $0x90] sm:$0xf] %vm1279_vm2, %v2596_v31  ;;  %v2615_v20 = vpack.c.bf16 %v998_v27, %v998_v27  ;;  %v996_v63 = vmul.f32 %v2000_v62, %v2416_v28  ;;  %2027 = vpow2.f32 %v797_v58  ;;  %3572 = vst [vmem:[#allocation5_spill] sm:$0xff] %v2627_v59  ;;  %v2644_v8 = vmul.f32 1.442695, %v657_v12 }
  0xfb   :  { %v2004_v11 = vpop.eup %2003  ;;  %1287 = vst.msk [vmem:[%s3558_s3 + $0x1c] sm:$0xf] %vm1279_vm2, %v2606_v47  ;;  %v2624_v24 = vpack.c.bf16 %v964_v35, %v964_v35  ;;  %v841_v54 = vadd.f32 1.0, %v2002_v45  ;;  %2029 = vpow2.f32 %v729_v5  ;;  %3573 = vst [vmem:[#allocation6_spill] sm:$0xff] %v2637_v33  ;;  %v658_v19 = vsub.f32 0.0, %v2627_v59 }
  0xfc   :  { %v2006_v28 = vpop.eup %2005  ;;  %1319 = vst.msk [vmem:[%s3558_s3 + $0x9c] sm:$0xf] %vm1279_vm2, %v2615_v20  ;;  %v2634_v58 = vpack.c.bf16 %v996_v63, %v996_v63  ;;  %v873_v14 = vadd.f32 1.0, %v2004_v11  ;;  %2031 = vpow2.f32 %v793_v7  ;;  %v2652_v21 = vmul.f32 1.442695, %v689_v16  ;;  %v1890_v63 = vpop.f32.mrf.mxu1 }
  0xfd   :  { %v2008_v5 = vpop.eup %2007  ;;  %1285 = vst.msk [vmem:[%s3558_s3 + $0x14] sm:$0xf] %vm1279_vm2, %v2624_v24  ;;  %2033 = vrcp.f32 %v841_v54  ;;  %v839_v10 = vadd.f32 1.0, %v2006_v28  ;;  %v2655_v27 = vadd.f32 %v2354_v34, %v451_v53  ;;  %v2657_v35 = vmul.f32 1.442695, %v655_v1  ;;  %v464_v11 = vpop.f32.mrf.mxu0 }
  0xfe   :  { %v2010_v25 = vpop.eup %2009  ;;  %1317 = vst.msk [vmem:[%s3558_s3 + $0x94] sm:$0xf] %vm1279_vm2, %v2634_v58  ;;  %2035 = vrcp.f32 %v873_v14  ;;  %v871_v7 = vadd.f32 1.0, %v2008_v5  ;;  %v690_v45 = vsub.f32 0.0, %v2637_v33  ;;  %v2660_v59 = vmul.f32 1.442695, %v687_v6 }
  0xff   :  { %3574 = vst [vmem:[#allocation7_spill] sm:$0xff] %v2655_v27  ;;  %v2012_v62 = vpop.eup %2011  ;;  %2037 = vrcp.f32 %v839_v10  ;;  %v842_v12 = vadd.f32 1.0, %v2010_v25  ;;  %v2663_v16 = vadd.f32 %v2354_v34, %v579_v17  ;;  %v2665_v5 = vmul.f32 1.442695, %v658_v19 }
 0x100   :  { %v2014_v54 = vpop.eup %2013  ;;  %2039 = vrcp.f32 %v871_v7  ;;  %v874_v28 = vadd.f32 1.0, %v2012_v62  ;;  %v2668_v1 = vadd.f32 %v1858_v26, %v2354_v34  ;;  %v656_v33 = vsub.f32 0.0, %v2655_v27 }
 0x101   :  { %v2016_v14 = vpop.eup %2015  ;;  %2041 = vrcp.f32 %v842_v12  ;;  %v840_v53 = vadd.f32 1.0, %v2014_v54  ;;  %v2672_v7 = vadd.f32 %v1890_v63, %v2354_v34  ;;  %v2674_v62 = vmul.f32 1.442695, %v690_v45  ;;  %v592_v12 = vpop.f32.mrf.mxu1 }
 0x102   :  { %v2018_v10 = vpop.eup %2017  ;;  %2043 = vrcp.f32 %v874_v28  ;;  %v872_v25 = vadd.f32 1.0, %v2016_v14  ;;  %v993_v19 = vmul.f32 %v2488_v42, %v2360_v38  ;;  %v1859_v54 = vpop.f32.mrf.mxu0  ;;  %v688_v28 = vsub.f32 0.0, %v2663_v16 }
 0x103   :  { %v2020_v6 = vpop.eup %2019  ;;  %2045 = vrcp.f32 %v840_v53  ;;  %v845_v17 = vadd.f32 1.0, %v2018_v10  ;;  %v961_v14 = vmul.f32 %v2483_v30, %v2357_v36  ;;  %v661_v53 = vsub.f32 0.0, %v2668_v1 }
 0x104   :  { %v2022_v26 = vpop.eup %2021  ;;  %2047 = vrcp.f32 %v872_v25  ;;  %v877_v23 = vadd.f32 1.0, %v2020_v6  ;;  %v1771_v45 = vpack.c.bf16 %v993_v19, %v993_v19  ;;  %v693_v38 = vsub.f32 0.0, %v2672_v7  ;;  %v467_v6 = vpop.f32.mrf.mxu0 }
 0x105   :  { %v2024_v63 = vpop.eup %2023  ;;  %2049 = vrcp.f32 %v845_v17  ;;  %v843_v27 = vadd.f32 1.0, %v2022_v26  ;;  %v1739_v42 = vpack.c.bf16 %v961_v14, %v961_v14  ;;  %v2689_v36 = vadd.f32 %v2354_v34, %v464_v11 }
 0x106   :  { %v2026_v10 = vpop.eup %2025  ;;  %2051 = vrcp.f32 %v877_v23  ;;  %v875_v41 = vadd.f32 1.0, %v2024_v63  ;;  %1412 = vrot.lane.b32.xlu0 %v1771_v45, %s2194_s0  ;;  %1314 = vst.msk [vmem:[%s3558_s3 + $0x88] sm:$0xf] %vm1279_vm2, %v1771_v45  ;;  %v2692_v30 = vadd.f32 %v2354_v34, %v592_v12  ;;  %v1891_v23 = vpop.f32.mrf.mxu1  ;;  %v2700_v19 = vadd.f32 %v1859_v54, %v2354_v34 }
 0x107   :  { %v2028_v13 = vpop.eup %2027  ;;  %2053 = vrcp.f32 %v843_v27  ;;  %v846_v25 = vadd.f32 1.0, %v2026_v10  ;;  %1348 = vrot.lane.b32.xlu1 %v1739_v42, %s2194_s0  ;;  %1282 = vst.msk [vmem:[%s3558_s3 + $0x8] sm:$0xf] %vm1279_vm2, %v1739_v42  ;;  %v2703_v11 = vadd.f32 %v1891_v23, %v2354_v34  ;;  %v2705_v14 = vmul.f32 1.442695, %v656_v33 }
 0x108   :  { %v2030_v17 = vpop.eup %2029  ;;  %2055 = vrcp.f32 %v875_v41  ;;  %v878_v27 = vadd.f32 1.0, %v2028_v13  ;;  %v2707_v41 = vmul.f32 1.442695, %v688_v28  ;;  %v2709_v13 = vpop.f32.mrf.mxu0  ;;  %v2711_v10 = vmul.f32 1.442695, %v661_v53 }
 0x109   :  { %v2032_v12 = vpop.eup %2031  ;;  %2057 = vrcp.f32 %v846_v25  ;;  %v844_v26 = vadd.f32 1.0, %v2030_v17  ;;  %v2713_v42 = vmul.f32 1.442695, %v693_v38  ;;  %v659_v25 = vsub.f32 0.0, %v2689_v36  ;;  %v595_v28 = vpop.f32.mrf.mxu1 }
 0x10a   :  { %v2034_v63 = vpop.eup %2033  ;;  %2059 = vrcp.f32 %v878_v27  ;;  %v876_v45 = vadd.f32 1.0, %v2032_v12  ;;  %v691_v33 = vsub.f32 0.0, %v2692_v30  ;;  %1344 = vrot.lane.b32.xlu0 %v2514_v18, %s2194_s0  ;;  %v662_v53 = vsub.f32 0.0, %v2700_v19 }
 0x10b   :  { %v2036_v54 = vpop.eup %2035  ;;  %v969_v23 = vmul.f32 %v2034_v63, %v2420_v32  ;;  %2061 = vrcp.f32 %v844_v26  ;;  %v694_v38 = vsub.f32 0.0, %v2703_v11  ;;  %1350 = vrot.lane.b32.xlu1 %v2529_v48, %s2194_s0  ;;  %v2730_v18 = vadd.f32 %v2354_v34, %v467_v6  ;;  %v2732_v63 = vpop.f32.mrf.mxu0 }
 0x10c   :  { %v2038_v17 = vpop.eup %2037  ;;  %v1001_v27 = vmul.f32 %v2036_v54, %v2424_v39  ;;  %2063 = vrcp.f32 %v876_v45  ;;  %v2739_v48 = vadd.f32 %v2354_v34, %v595_v28  ;;  %v743_v6 = vmul.f32 1.442695, %v659_v25 }
 0x10d   :  { %v2040_v32 = vpop.eup %2039  ;;  %v2725_v12 = vpack.c.bf16 %v969_v23, %v969_v23  ;;  %v967_v26 = vmul.f32 %v2038_v17, %v2427_v43  ;;  %2065 = vpow2.f32 %v2644_v8 }
 0x10e   :  { %v2042_v39 = vpop.eup %2041  ;;  %v2734_v45 = vpack.c.bf16 %v1001_v27, %v1001_v27  ;;  %v999_v54 = vmul.f32 %v2040_v32, %v2430_v49  ;;  %2067 = vpow2.f32 %v2652_v21  ;;  %1408 = vrot.lane.b32.xlu0 %v2519_v44, %s2194_s0 }
 0x10f   :  { %v2044_v23 = vpop.eup %2043  ;;  %1290 = vst.msk [vmem:[%s3558_s3 + $0x28] sm:$0xf] %vm1279_vm2, %v2725_v12  ;;  %v2746_v43 = vpack.c.bf16 %v967_v26, %v967_v26  ;;  %v970_v8 = vmul.f32 %v2042_v39, %v2436_v2  ;;  %2069 = vpow2.f32 %v2657_v35  ;;  %v807_v2 = vmul.f32 1.442695, %v691_v33  ;;  %1414 = vrot.lane.b32.xlu1 %v2538_v52, %s2194_s0 }
 0x110   :  { %v2046_v49 = vpop.eup %2045  ;;  %1322 = vst.msk [vmem:[%s3558_s3 + $0xa8] sm:$0xf] %vm1279_vm2, %v2734_v45  ;;  %v2757_v21 = vpack.c.bf16 %v999_v54, %v999_v54  ;;  %v1002_v28 = vmul.f32 %v2044_v23, %v2440_v9  ;;  %2071 = vpow2.f32 %v2660_v59  ;;  %v660_v9 = vsub.f32 0.0, %v2730_v18  ;;  %v1863_v59 = vpop.f32.mrf.mxu0 }
 0x111   :  { %v2048_v35 = vpop.eup %2047  ;;  %1288 = vst.msk [vmem:[%s3558_s3 + $0x20] sm:$0xf] %vm1279_vm2, %v2746_v43  ;;  %v2768_v44 = vpack.c.bf16 %v970_v8, %v970_v8  ;;  %v968_v25 = vmul.f32 %v2046_v49, %v2448_v22  ;;  %2073 = vpow2.f32 %v2665_v5  ;;  %v692_v22 = vsub.f32 0.0, %v2739_v48 }
 0x112   :  { %v2050_v33 = vpop.eup %2049  ;;  %1320 = vst.msk [vmem:[%s3558_s3 + $0xa0] sm:$0xf] %vm1279_vm2, %v2757_v21  ;;  %v2778_v52 = vpack.c.bf16 %v1002_v28, %v1002_v28  ;;  %v1000_v17 = vmul.f32 %v2048_v35, %v2456_v37  ;;  %2075 = vpow2.f32 %v2674_v62  ;;  %v749_v26 = vmul.f32 1.442695, %v662_v53  ;;  %1346 = vrot.lane.b32.xlu0 %v2547_v56, %s2194_s0  ;;  %v1894_v37 = vpop.f32.mrf.mxu1 }
 0x113   :  { %v2052_v27 = vpop.eup %2051  ;;  %1291 = vst.msk [vmem:[%s3558_s3 + $0x2c] sm:$0xf] %vm1279_vm2, %v2768_v44  ;;  %v2788_v5 = vpack.c.bf16 %v968_v25, %v968_v25  ;;  %v973_v32 = vmul.f32 %v2050_v33, %v2461_v46  ;;  %2077 = vpow2.f32 %v2705_v14  ;;  %v813_v46 = vmul.f32 1.442695, %v694_v38  ;;  %1410 = vrot.lane.b32.xlu1 %v2555_v60, %s2194_s0  ;;  %v2814_v23 = vpop.f32.mrf.mxu0 }
 0x114   :  { %v2054_v62 = vpop.eup %2053  ;;  %1323 = vst.msk [vmem:[%s3558_s3 + $0xac] sm:$0xf] %vm1279_vm2, %v2778_v52  ;;  %v2799_v39 = vpack.c.bf16 %v1000_v17, %v1000_v17  ;;  %v1005_v54 = vmul.f32 %v2052_v27, %v2465_v55  ;;  %2079 = vpow2.f32 %v2707_v41  ;;  %v745_v55 = vmul.f32 1.442695, %v660_v9 }
 0x115   :  { %v2056_v14 = vpop.eup %2055  ;;  %1289 = vst.msk [vmem:[%s3558_s3 + $0x24] sm:$0xf] %vm1279_vm2, %v2788_v5  ;;  %v2810_v56 = vpack.c.bf16 %v973_v32, %v973_v32  ;;  %v971_v53 = vmul.f32 %v2054_v62, %v2470_v61  ;;  %2081 = vpow2.f32 %v2711_v10  ;;  %v809_v8 = vmul.f32 1.442695, %v692_v22 }
 0x116   :  { %v2058_v41 = vpop.eup %2057  ;;  %1321 = vst.msk [vmem:[%s3558_s3 + $0xa4] sm:$0xf] %vm1279_vm2, %v2799_v39  ;;  %v2821_v60 = vpack.c.bf16 %v1005_v54, %v1005_v54  ;;  %v1003_v38 = vmul.f32 %v2056_v14, %v2474_v3  ;;  %2083 = vpow2.f32 %v2713_v42  ;;  %v2835_v28 = vadd.f32 %v2709_v13, %v2354_v34  ;;  %1356 = vrot.lane.b32.xlu0 %v2563_v0, %s2194_s0  ;;  %v608_v3 = vpop.f32.mrf.mxu1 }
 0x117   :  { %v2060_v61 = vpop.eup %2059  ;;  %1294 = vst.msk [vmem:[%s3558_s3 + $0x38] sm:$0xf] %vm1279_vm2, %v2810_v56  ;;  %v2830_v10 = vpack.c.bf16 %v971_v53, %v971_v53  ;;  %v974_v49 = vmul.f32 %v2058_v41, %v2481_v29  ;;  %2085 = vpow2.f32 %v743_v6  ;;  %v2839_v42 = vpop.f32.mrf.mxu0  ;;  %v2851_v13 = vadd.f32 %v2354_v34, %v2732_v63  ;;  %1358 = vrot.lane.b32.xlu1 %v2606_v47, %s2194_s0 }
 0x118   :  { %v2062_v35 = vpop.eup %2061  ;;  %1326 = vst.msk [vmem:[%s3558_s3 + $0xb8] sm:$0xf] %vm1279_vm2, %v2821_v60  ;;  %v2846_v25 = vpack.c.bf16 %v1003_v38, %v1003_v38  ;;  %v1006_v29 = vmul.f32 %v2060_v61, %v2486_v40  ;;  %2087 = vpow2.f32 %v807_v2  ;;  %v2864_v40 = vadd.f32 %v1863_v59, %v2354_v34  ;;  %v1895_v27 = vpop.f32.mrf.mxu1  ;;  %v2914_v38 = vld [vmem:[%s3557_s2] ss:$0 sm:$0xff] }
 0x119   :  { %v2064_v0 = vpop.eup %2063  ;;  %1292 = vst.msk [vmem:[%s3558_s3 + $0x30] sm:$0xf] %vm1279_vm2, %v2830_v10  ;;  %v2860_v6 = vpack.c.bf16 %v974_v49, %v974_v49  ;;  %v972_v9 = vmul.f32 %v2062_v35, %v2493_v57  ;;  %2089 = vpow2.f32 %v749_v26  ;;  %v2875_v33 = vadd.f32 %v1894_v37, %v2354_v34 }
 0x11a   :  { %v2066_v63 = vpop.eup %2065  ;;  %1324 = vst.msk [vmem:[%s3558_s3 + $0xb0] sm:$0xf] %vm1279_vm2, %v2846_v25  ;;  %v2871_v47 = vpack.c.bf16 %v1006_v29, %v1006_v29  ;;  %v1004_v2 = vmul.f32 %v2064_v0, %v2500_v50  ;;  %2091 = vpow2.f32 %v813_v46  ;;  %v665_v22 = vsub.f32 0.0, %v2835_v28  ;;  %1420 = vrot.lane.b32.xlu0 %v2574_v4, %s2194_s0  ;;  %v496_v50 = vpop.f32.mrf.mxu0 }
 0x11b   :  { %v2068_v57 = vpop.eup %2067  ;;  %1295 = vst.msk [vmem:[%s3558_s3 + $0x3c] sm:$0xf] %vm1279_vm2, %v2860_v6  ;;  %v2882_v59 = vpack.c.bf16 %v972_v9, %v972_v9  ;;  %v849_v17 = vadd.f32 1.0, %v2066_v63  ;;  %2093 = vpow2.f32 %v745_v55  ;;  %v663_v37 = vsub.f32 0.0, %v2851_v13  ;;  %1422 = vrot.lane.b32.xlu1 %v2615_v20, %s2194_s0  ;;  %v611_v61 = vpop.f32.mrf.mxu1 }
 0x11c   :  { %v2070_v34 = vpop.eup %2069  ;;  %1327 = vst.msk [vmem:[%s3558_s3 + $0xbc] sm:$0xf] %vm1279_vm2, %v2871_v47  ;;  %v2892_v32 = vpack.c.bf16 %v1004_v2, %v1004_v2  ;;  %v881_v26 = vadd.f32 1.0, %v2068_v57  ;;  %2095 = vpow2.f32 %v809_v8  ;;  %v666_v54 = vsub.f32 0.0, %v2864_v40  ;;  %v1867_v49 = vpop.f32.mrf.mxu0 }
 0x11d   :  { %v2072_v62 = vpop.eup %2071  ;;  %1293 = vst.msk [vmem:[%s3558_s3 + $0x34] sm:$0xf] %vm1279_vm2, %v2882_v59  ;;  %2097 = vrcp.f32 %v849_v17  ;;  %v847_v4 = vadd.f32 1.0, %v2070_v34  ;;  %v697_v14 = vsub.f32 0.0, %v2875_v33  ;;  %v2909_v41 = vmul.f32 1.442695, %v665_v22 }
 0x11e   :  { %v2074_v46 = vpop.eup %2073  ;;  %1325 = vst.msk [vmem:[%s3558_s3 + $0xb4] sm:$0xf] %vm1279_vm2, %v2892_v32  ;;  %2099 = vrcp.f32 %v881_v26  ;;  %v879_v20 = vadd.f32 1.0, %v2072_v62  ;;  %v2918_v8 = vadd.f32 %v2914_v38, %v2814_v23  ;;  %1352 = vrot.lane.b32.xlu0 %v2586_v51, %s2194_s0  ;;  %v2922_v0 = vmul.f32 1.442695, %v663_v37  ;;  %v2934_v51 = vpop.f32.mrf.mxu1 }
 0x11f   :  { %v2076_v53 = vpop.eup %2075  ;;  %2101 = vrcp.f32 %v847_v4  ;;  %v850_v55 = vadd.f32 1.0, %v2074_v46  ;;  %v2925_v9 = vadd.f32 %v2914_v38, %v608_v3  ;;  %1354 = vrot.lane.b32.xlu1 %v2624_v24, %s2194_s0  ;;  %v2929_v2 = vmul.f32 1.442695, %v666_v54 }
 0x120   :  { %v2078_v35 = vpop.eup %2077  ;;  %2103 = vrcp.f32 %v879_v20  ;;  %v882_v29 = vadd.f32 1.0, %v2076_v53  ;;  %v2932_v57 = vadd.f32 %v2914_v38, %v1895_v27  ;;  %v2936_v34 = vmul.f32 1.442695, %v697_v14  ;;  %v499_v27 = vpop.f32.mrf.mxu0 }
 0x121   :  { %v2080_v63 = vpop.eup %2079  ;;  %2105 = vrcp.f32 %v850_v55  ;;  %v848_v23 = vadd.f32 1.0, %v2078_v35  ;;  %v2939_v3 = vadd.f32 %v2914_v38, %v611_v61  ;;  %v664_v37 = vsub.f32 0.0, %v2918_v8 }
 0x122   :  { %v2082_v17 = vpop.eup %2081  ;;  %2107 = vrcp.f32 %v882_v29  ;;  %v880_v22 = vadd.f32 1.0, %v2080_v63  ;;  %v2944_v62 = vadd.f32 %v2914_v38, %v2839_v42  ;;  %1416 = vrot.lane.b32.xlu0 %v2596_v31, %s2194_s0  ;;  %v695_v46 = vsub.f32 0.0, %v2925_v9  ;;  %v624_v31 = vpop.f32.mrf.mxu1 }
 0x123   :  { %v2084_v26 = vpop.eup %2083  ;;  %2109 = vrcp.f32 %v848_v23  ;;  %v853_v24 = vadd.f32 1.0, %v2082_v17  ;;  %1418 = vrot.lane.b32.xlu1 %v2634_v58, %s2194_s0  ;;  %v2952_v20 = vadd.f32 %v2914_v38, %v496_v50  ;;  %v698_v42 = vsub.f32 0.0, %v2932_v57 }
 0x124   :  { %3575 = vst [vmem:[#allocation8_spill] sm:$0xff] %v2944_v62  ;;  %v2086_v4 = vpop.eup %2085  ;;  %2111 = vrcp.f32 %v880_v22  ;;  %v885_v54 = vadd.f32 1.0, %v2084_v26  ;;  %v2956_v55 = vadd.f32 %v2914_v38, %v1867_v49  ;;  %v696_v29 = vsub.f32 0.0, %v2939_v3 }
 0x125   :  { %3576 = vst [vmem:[#allocation9_spill] sm:$0xff] %v2952_v20  ;;  %v2088_v14 = vpop.eup %2087  ;;  %2113 = vrcp.f32 %v853_v24  ;;  %v851_v53 = vadd.f32 1.0, %v2086_v4  ;;  %v2960_v63 = vadd.f32 %v2914_v38, %v499_v27  ;;  %v669_v23 = vsub.f32 0.0, %v2944_v62 }
 0x126   :  { %3577 = vst [vmem:[#allocation10_spill] sm:$0xff] %v2956_v55  ;;  %v2090_v61 = vpop.eup %2089  ;;  %2115 = vrcp.f32 %v885_v54  ;;  %v883_v35 = vadd.f32 1.0, %v2088_v14  ;;  %v667_v17 = vsub.f32 0.0, %v2952_v20  ;;  %1364 = vrot.lane.b32.xlu0 %v2725_v12, %s2194_s0  ;;  %v753_v26 = vmul.f32 1.442695, %v664_v37 }
 0x127   :  { %v2092_v58 = vpop.eup %2091  ;;  %2117 = vrcp.f32 %v851_v53  ;;  %v854_v50 = vadd.f32 1.0, %v2090_v61  ;;  %v670_v24 = vsub.f32 0.0, %v2956_v55  ;;  %1366 = vrot.lane.b32.xlu1 %v2768_v44, %s2194_s0  ;;  %v815_v54 = vmul.f32 1.442695, %v695_v46  ;;  %v1899_v53 = vpop.f32.mrf.mxu1  ;;  %v3578_v46 = vld [vmem:[#allocation2_spill] sm:$0xff] }
 0x128   :  { %v2094_v49 = vpop.eup %2093  ;;  %2119 = vrcp.f32 %v883_v35  ;;  %v886_v22 = vadd.f32 1.0, %v2092_v58  ;;  %v668_v14 = vsub.f32 0.0, %v2960_v63  ;;  %v821_v12 = vmul.f32 1.442695, %v698_v42 }
 0x129   :  { %v2096_v27 = vpop.eup %2095  ;;  %2121 = vrcp.f32 %v854_v50  ;;  %v852_v4 = vadd.f32 1.0, %v2094_v49  ;;  %v817_v62 = vmul.f32 1.442695, %v696_v29  ;;  %v2971_v58 = vmul.f32 1.442695, %v669_v23  ;;  %v3579_v23 = vld [vmem:[#allocation3_spill] sm:$0xff] }
 0x12a   :  { %v2098_v61 = vpop.eup %2097  ;;  %2123 = vrcp.f32 %v886_v22  ;;  %v884_v20 = vadd.f32 1.0, %v2096_v27  ;;  %v2973_v55 = vmul.f32 1.442695, %v667_v17  ;;  %1428 = vrot.lane.b32.xlu0 %v2734_v45, %s2194_s0  ;;  %v2978_v49 = vmul.f32 1.442695, %v670_v24  ;;  %v627_v22 = vpop.f32.mrf.mxu1  ;;  %v3580_v27 = vld [vmem:[#allocation4_spill] sm:$0xff] }
 0x12b   :  { %v2100_v35 = vpop.eup %2099  ;;  %v977_v37 = vmul.f32 %v2098_v61, %v2509_v15  ;;  %2125 = vrcp.f32 %v852_v4  ;;  %v2982_v42 = vadd.f32 %v2914_v38, %v2934_v51  ;;  %1430 = vrot.lane.b32.xlu1 %v2778_v52, %s2194_s0  ;;  %v2990_v45 = vmul.f32 1.442695, %v668_v14  ;;  %v3581_v14 = vld [vmem:[#allocation5_spill] sm:$0xff] }
 0x12c   :  { %v2102_v44 = vpop.eup %2101  ;;  %v1009_v50 = vmul.f32 %v2100_v35, %v3578_v46  ;;  %2127 = vrcp.f32 %v884_v20  ;;  %v2997_v51 = vadd.f32 %v2914_v38, %v624_v31  ;;  %v3009_v35 = vadd.f32 %v2914_v38, %v1899_v53  ;;  %v3583_v46 = vld [vmem:[#allocation7_spill] sm:$0xff] }
 0x12d   :  { %v2104_v15 = vpop.eup %2103  ;;  %v2986_v29 = vpack.c.bf16 %v977_v37, %v977_v37  ;;  %v975_v17 = vmul.f32 %v2102_v44, %v3579_v23  ;;  %2129 = vpow2.f32 %v2909_v41  ;;  %v3582_v37 = vld [vmem:[#allocation6_spill] sm:$0xff] }
 0x12e   :  { %v2106_v20 = vpop.eup %2105  ;;  %v2992_v24 = vpack.c.bf16 %v1009_v50, %v1009_v50  ;;  %v1007_v4 = vmul.f32 %v2104_v15, %v3580_v27  ;;  %2131 = vpow2.f32 %v2922_v0  ;;  %1360 = vrot.lane.b32.xlu0 %v2746_v43, %s2194_s0  ;;  %v699_v23 = vsub.f32 0.0, %v2997_v51 }
 0x12f   :  { %v2108_v52 = vpop.eup %2107  ;;  %1298 = vst.msk [vmem:[%s3558_s3 + $0x48] sm:$0xf] %vm1279_vm2, %v2986_v29  ;;  %v3004_v41 = vpack.c.bf16 %v975_v17, %v975_v17  ;;  %v978_v61 = vmul.f32 %v2106_v20, %v3581_v14  ;;  %2133 = vpow2.f32 %v2929_v2  ;;  %v3023_v2 = vadd.f32 %v2914_v38, %v627_v22  ;;  %1362 = vrot.lane.b32.xlu1 %v2788_v5, %s2194_s0 }
 0x130   :  { %v2110_v0 = vpop.eup %2109  ;;  %1330 = vst.msk [vmem:[%s3558_s3 + $0xc8] sm:$0xf] %vm1279_vm2, %v2992_v24  ;;  %v3018_v31 = vpack.c.bf16 %v1007_v4, %v1007_v4  ;;  %v1010_v44 = vmul.f32 %v2108_v52, %v3582_v37  ;;  %2135 = vpow2.f32 %v2936_v34  ;;  %v701_v34 = vsub.f32 0.0, %v2982_v42 }
 0x131   :  { %v2112_v43 = vpop.eup %2111  ;;  %1296 = vst.msk [vmem:[%s3558_s3 + $0x40] sm:$0xf] %vm1279_vm2, %v3004_v41  ;;  %v3032_v53 = vpack.c.bf16 %v978_v61, %v978_v61  ;;  %v976_v50 = vmul.f32 %v2110_v0, %v3583_v46  ;;  %2137 = vpow2.f32 %v753_v26  ;;  %v702_v20 = vsub.f32 0.0, %v3009_v35 }
 0x132   :  { %v2114_v15 = vpop.eup %2113  ;;  %1328 = vst.msk [vmem:[%s3558_s3 + $0xc0] sm:$0xf] %vm1279_vm2, %v3018_v31  ;;  %v3041_v5 = vpack.c.bf16 %v1010_v44, %v1010_v44  ;;  %v1008_v38 = vmul.f32 %v2112_v43, %v2663_v16  ;;  %2139 = vpow2.f32 %v815_v54  ;;  %1424 = vrot.lane.b32.xlu0 %v2757_v21, %s2194_s0  ;;  %v823_v14 = vmul.f32 1.442695, %v699_v23 }
 0x133   :  { %v2116_v17 = vpop.eup %2115  ;;  %1299 = vst.msk [vmem:[%s3558_s3 + $0x4c] sm:$0xf] %vm1279_vm2, %v3032_v53  ;;  %v3050_v26 = vpack.c.bf16 %v976_v50, %v976_v50  ;;  %v981_v22 = vmul.f32 %v2114_v15, %v2668_v1  ;;  %2141 = vpow2.f32 %v821_v12  ;;  %v700_v1 = vsub.f32 0.0, %v3023_v2  ;;  %1426 = vrot.lane.b32.xlu1 %v2799_v39, %s2194_s0 }
 0x134   :  { %v2118_v16 = vpop.eup %2117  ;;  %1331 = vst.msk [vmem:[%s3558_s3 + $0xcc] sm:$0xf] %vm1279_vm2, %v3041_v5  ;;  %v3061_v54 = vpack.c.bf16 %v1008_v38, %v1008_v38  ;;  %v1013_v27 = vmul.f32 %v2116_v17, %v2672_v7  ;;  %2143 = vpow2.f32 %v817_v62  ;;  %v827_v7 = vmul.f32 1.442695, %v701_v34 }
 0x135   :  { %v2120_v12 = vpop.eup %2119  ;;  %1297 = vst.msk [vmem:[%s3558_s3 + $0x44] sm:$0xf] %vm1279_vm2, %v3050_v26  ;;  %v3072_v21 = vpack.c.bf16 %v981_v22, %v981_v22  ;;  %v979_v4 = vmul.f32 %v2118_v16, %v2689_v36  ;;  %2145 = vpow2.f32 %v2971_v58  ;;  %v829_v0 = vmul.f32 1.442695, %v702_v20 }
 0x136   :  { %v2122_v62 = vpop.eup %2121  ;;  %1329 = vst.msk [vmem:[%s3558_s3 + $0xc4] sm:$0xf] %vm1279_vm2, %v3061_v54  ;;  %v3081_v39 = vpack.c.bf16 %v1013_v27, %v1013_v27  ;;  %v1011_v52 = vmul.f32 %v2120_v12, %v2692_v30  ;;  %2147 = vpow2.f32 %v2973_v55  ;;  %1372 = vrot.lane.b32.xlu0 %v2810_v56, %s2194_s0 }
 0x137   :  { %v2124_v61 = vpop.eup %2123  ;;  %1302 = vst.msk [vmem:[%s3558_s3 + $0x58] sm:$0xf] %vm1279_vm2, %v3072_v21  ;;  %v3090_v36 = vpack.c.bf16 %v979_v4, %v979_v4  ;;  %v982_v58 = vmul.f32 %v2122_v62, %v2700_v19  ;;  %2149 = vpow2.f32 %v2978_v49  ;;  %v825_v19 = vmul.f32 1.442695, %v700_v1  ;;  %1374 = vrot.lane.b32.xlu1 %v2860_v6, %s2194_s0 }
 0x138   :  { %v2126_v30 = vpop.eup %2125  ;;  %1334 = vst.msk [vmem:[%s3558_s3 + $0xd8] sm:$0xf] %vm1279_vm2, %v3081_v39  ;;  %v3101_v55 = vpack.c.bf16 %v1011_v52, %v1011_v52  ;;  %v1014_v37 = vmul.f32 %v2124_v61, %v2703_v11  ;;  %2151 = vpow2.f32 %v2990_v45 }
 0x139   :  { %v2128_v49 = vpop.eup %2127  ;;  %1300 = vst.msk [vmem:[%s3558_s3 + $0x50] sm:$0xf] %vm1279_vm2, %v3090_v36  ;;  %v3112_v56 = vpack.c.bf16 %v982_v58, %v982_v58  ;;  %v980_v44 = vmul.f32 %v2126_v30, %v2730_v18  ;;  %2153 = vpow2.f32 %v827_v7 }
 0x13a   :  { %v2130_v43 = vpop.eup %2129  ;;  %1332 = vst.msk [vmem:[%s3558_s3 + $0xd0] sm:$0xf] %vm1279_vm2, %v3101_v55  ;;  %v3120_v11 = vpack.c.bf16 %v1014_v37, %v1014_v37  ;;  %v1012_v6 = vmul.f32 %v2128_v49, %v2739_v48  ;;  %2155 = vpow2.f32 %v823_v14  ;;  %1436 = vrot.lane.b32.xlu0 %v2821_v60, %s2194_s0 }
 0x13b   :  { %v2132_v45 = vpop.eup %2131  ;;  %1303 = vst.msk [vmem:[%s3558_s3 + $0x5c] sm:$0xf] %vm1279_vm2, %v3112_v56  ;;  %v3128_v18 = vpack.c.bf16 %v980_v44, %v980_v44  ;;  %v857_v46 = vadd.f32 1.0, %v2130_v43  ;;  %2157 = vpow2.f32 %v829_v0  ;;  %1438 = vrot.lane.b32.xlu1 %v2871_v47, %s2194_s0 }
 0x13c   :  { %v2134_v50 = vpop.eup %2133  ;;  %1335 = vst.msk [vmem:[%s3558_s3 + $0xdc] sm:$0xf] %vm1279_vm2, %v3120_v11  ;;  %v3137_v48 = vpack.c.bf16 %v1012_v6, %v1012_v6  ;;  %v855_v34 = vadd.f32 1.0, %v2132_v45  ;;  %2159 = vpow2.f32 %v825_v19 }
 0x13d   :  { %v2136_v15 = vpop.eup %2135  ;;  %1301 = vst.msk [vmem:[%s3558_s3 + $0x54] sm:$0xf] %vm1279_vm2, %v3128_v18  ;;  %2161 = vrcp.f32 %v857_v46  ;;  %v858_v60 = vadd.f32 1.0, %v2134_v50 }
 0x13e   :  { %v2138_v38 = vpop.eup %2137  ;;  %1333 = vst.msk [vmem:[%s3558_s3 + $0xd4] sm:$0xf] %vm1279_vm2, %v3137_v48  ;;  %2163 = vrcp.f32 %v855_v34  ;;  %v889_v23 = vadd.f32 1.0, %v2136_v15  ;;  %1368 = vrot.lane.b32.xlu0 %v2830_v10, %s2194_s0 }
 0x13f   :  { %v2140_v17 = vpop.eup %2139  ;;  %2165 = vrcp.f32 %v858_v60  ;;  %v856_v47 = vadd.f32 1.0, %v2138_v38  ;;  %1370 = vrot.lane.b32.xlu1 %v2882_v59, %s2194_s0 }
 0x140   :  { %v2142_v22 = vpop.eup %2141  ;;  %2167 = vrcp.f32 %v889_v23  ;;  %v887_v20 = vadd.f32 1.0, %v2140_v17 }
 0x141   :  { %v2144_v16 = vpop.eup %2143  ;;  %2169 = vrcp.f32 %v856_v47  ;;  %v890_v27 = vadd.f32 1.0, %v2142_v22  ;;  %v3584_v47 = vld [vmem:[#allocation8_spill] sm:$0xff] }
 0x142   :  { %v2146_v1 = vpop.eup %2145  ;;  %2171 = vrcp.f32 %v887_v20  ;;  %v888_v12 = vadd.f32 1.0, %v2144_v16  ;;  %1432 = vrot.lane.b32.xlu0 %v2846_v25, %s2194_s0 }
 0x143   :  { %v2148_v4 = vpop.eup %2147  ;;  %2173 = vrcp.f32 %v890_v27  ;;  %v861_v7 = vadd.f32 1.0, %v2146_v1  ;;  %1434 = vrot.lane.b32.xlu1 %v2892_v32, %s2194_s0 }
 0x144   :  { %v2150_v62 = vpop.eup %2149  ;;  %2175 = vrcp.f32 %v888_v12  ;;  %v859_v10 = vadd.f32 1.0, %v2148_v4 }
 0x145   :  { %v2152_v52 = vpop.eup %2151  ;;  %2177 = vrcp.f32 %v861_v7  ;;  %v862_v59 = vadd.f32 1.0, %v2150_v62 }
 0x146   :  { %v2154_v14 = vpop.eup %2153  ;;  %2179 = vrcp.f32 %v859_v10  ;;  %v860_v61 = vadd.f32 1.0, %v2152_v52  ;;  %1380 = vrot.lane.b32.xlu0 %v2986_v29, %s2194_s0 }
 0x147   :  { %v2156_v58 = vpop.eup %2155  ;;  %2181 = vrcp.f32 %v862_v59  ;;  %v893_v0 = vadd.f32 1.0, %v2154_v14  ;;  %1382 = vrot.lane.b32.xlu1 %v3032_v53, %s2194_s0 }
 0x148   :  { %v2158_v30 = vpop.eup %2157  ;;  %2183 = vrcp.f32 %v860_v61  ;;  %v891_v25 = vadd.f32 1.0, %v2156_v58 }
 0x149   :  { %v2160_v37 = vpop.eup %2159  ;;  %2185 = vrcp.f32 %v893_v0  ;;  %v894_v32 = vadd.f32 1.0, %v2158_v30 }
 0x14a   :  { %v2162_v19 = vpop.eup %2161  ;;  %2187 = vrcp.f32 %v891_v25  ;;  %v892_v49 = vadd.f32 1.0, %v2160_v37  ;;  %1444 = vrot.lane.b32.xlu0 %v2992_v24, %s2194_s0 }
 0x14b   :  { %v2164_v44 = vpop.eup %2163  ;;  %v985_v43 = vmul.f32 %v2162_v19, %v2835_v28  ;;  %2189 = vrcp.f32 %v894_v32  ;;  %1446 = vrot.lane.b32.xlu1 %v3041_v5, %s2194_s0 }
 0x14c   :  { %v2166_v29 = vpop.eup %2165  ;;  %v983_v6 = vmul.f32 %v2164_v44, %v2851_v13  ;;  %2191 = vrcp.f32 %v892_v49 }
 0x14d   :  { %v2168_v53 = vpop.eup %2167  ;;  %v3169_v45 = vpack.c.bf16 %v985_v43, %v985_v43  ;;  %v986_v46 = vmul.f32 %v2166_v29, %v2864_v40 }
 0x14e   :  { %v2170_v50 = vpop.eup %2169  ;;  %v3172_v34 = vpack.c.bf16 %v983_v6, %v983_v6  ;;  %v1017_v28 = vmul.f32 %v2168_v53, %v2875_v33  ;;  %1376 = vrot.lane.b32.xlu0 %v3004_v41, %s2194_s0 }
 0x14f   :  { %v2172_v15 = vpop.eup %2171  ;;  %1306 = vst.msk [vmem:[%s3558_s3 + $0x68] sm:$0xf] %vm1279_vm2, %v3169_v45  ;;  %v3180_v13 = vpack.c.bf16 %v986_v46, %v986_v46  ;;  %v984_v24 = vmul.f32 %v2170_v50, %v2918_v8  ;;  %1378 = vrot.lane.b32.xlu1 %v3050_v26, %s2194_s0 }
 0x150   :  { %v2174_v40 = vpop.eup %2173  ;;  %1304 = vst.msk [vmem:[%s3558_s3 + $0x60] sm:$0xf] %vm1279_vm2, %v3172_v34  ;;  %v1795_v33 = vpack.c.bf16 %v1017_v28, %v1017_v28  ;;  %v1015_v5 = vmul.f32 %v2172_v15, %v2925_v9 }
 0x151   :  { %v2176_v60 = vpop.eup %2175  ;;  %1307 = vst.msk [vmem:[%s3558_s3 + $0x6c] sm:$0xf] %vm1279_vm2, %v3180_v13  ;;  %v1762_v8 = vpack.c.bf16 %v984_v24, %v984_v24  ;;  %v1018_v41 = vmul.f32 %v2174_v40, %v2932_v57 }
 0x152   :  { %v2178_v38 = vpop.eup %2177  ;;  %1338 = vst.msk [vmem:[%s3558_s3 + $0xe8] sm:$0xf] %vm1279_vm2, %v1795_v33  ;;  %v1793_v9 = vpack.c.bf16 %v1015_v5, %v1015_v5  ;;  %v1016_v23 = vmul.f32 %v2176_v60, %v2939_v3  ;;  %1440 = vrot.lane.b32.xlu0 %v3018_v31, %s2194_s0  ;;  %v3585_v3 = vld [vmem:[#allocation9_spill] sm:$0xff]  ;;  %v3586_v31 = vld [vmem:[#allocation10_spill] sm:$0xff] }
 0x153   :  { %v2180_v26 = vpop.eup %2179  ;;  %1305 = vst.msk [vmem:[%s3558_s3 + $0x64] sm:$0xf] %vm1279_vm2, %v1762_v8  ;;  %v1796_v17 = vpack.c.bf16 %v1018_v41, %v1018_v41  ;;  %v989_v22 = vmul.f32 %v2178_v38, %v3584_v47  ;;  %1442 = vrot.lane.b32.xlu1 %v3061_v54, %s2194_s0 }
 0x154   :  { %v2182_v57 = vpop.eup %2181  ;;  %1336 = vst.msk [vmem:[%s3558_s3 + $0xe0] sm:$0xf] %vm1279_vm2, %v1793_v9  ;;  %v1794_v20 = vpack.c.bf16 %v1016_v23, %v1016_v23  ;;  %v987_v16 = vmul.f32 %v2180_v26, %v3585_v3 }
 0x155   :  { %v2184_v27 = vpop.eup %2183  ;;  %1339 = vst.msk [vmem:[%s3558_s3 + $0xec] sm:$0xf] %vm1279_vm2, %v1796_v17  ;;  %v1767_v1 = vpack.c.bf16 %v989_v22, %v989_v22  ;;  %v990_v12 = vmul.f32 %v2182_v57, %v3586_v31 }
 0x156   :  { %v2186_v4 = vpop.eup %2185  ;;  %1337 = vst.msk [vmem:[%s3558_s3 + $0xe4] sm:$0xf] %vm1279_vm2, %v1794_v20  ;;  %v1765_v7 = vpack.c.bf16 %v987_v16, %v987_v16  ;;  %v988_v62 = vmul.f32 %v2184_v27, %v2960_v63  ;;  %1388 = vrot.lane.b32.xlu0 %v3072_v21, %s2194_s0 }
 0x157   :  { %v2188_v10 = vpop.eup %2187  ;;  %1310 = vst.msk [vmem:[%s3558_s3 + $0x78] sm:$0xf] %vm1279_vm2, %v1767_v1  ;;  %v1768_v54 = vpack.c.bf16 %v990_v12, %v990_v12  ;;  %v1021_v52 = vmul.f32 %v2186_v4, %v2982_v42  ;;  %1390 = vrot.lane.b32.xlu1 %v3112_v56, %s2194_s0 }
 0x158   :  { %v2190_v59 = vpop.eup %2189  ;;  %1308 = vst.msk [vmem:[%s3558_s3 + $0x70] sm:$0xf] %vm1279_vm2, %v1765_v7  ;;  %v1766_v14 = vpack.c.bf16 %v988_v62, %v988_v62  ;;  %v1019_v63 = vmul.f32 %v2188_v10, %v2997_v51 }
 0x159   :  { %v2192_v61 = vpop.eup %2191  ;;  %1311 = vst.msk [vmem:[%s3558_s3 + $0x7c] sm:$0xf] %vm1279_vm2, %v1768_v54  ;;  %v1799_v42 = vpack.c.bf16 %v1021_v52, %v1021_v52  ;;  %v1022_v21 = vmul.f32 %v2190_v59, %v3009_v35 }
 0x15a   :  { %1309 = vst.msk [vmem:[%s3558_s3 + $0x74] sm:$0xf] %vm1279_vm2, %v1766_v14  ;;  %v1797_v58 = vpack.c.bf16 %v1019_v63, %v1019_v63  ;;  %v1020_v51 = vmul.f32 %v2192_v61, %v3023_v2  ;;  %1452 = vrot.lane.b32.xlu0 %v3081_v39, %s2194_s0 }
 0x15b   :  { %1342 = vst.msk [vmem:[%s3558_s3 + $0xf8] sm:$0xf] %vm1279_vm2, %v1799_v42  ;;  %v1800_v56 = vpack.c.bf16 %v1022_v21, %v1022_v21  ;;  %1454 = vrot.lane.b32.xlu1 %v3120_v11, %s2194_s0 }
 0x15c   :  { %1340 = vst.msk [vmem:[%s3558_s3 + $0xf0] sm:$0xf] %vm1279_vm2, %v1797_v58  ;;  %v1798_v35 = vpack.c.bf16 %v1020_v51, %v1020_v51 }
 0x15d   :  { %1343 = vst.msk [vmem:[%s3558_s3 + $0xfc] sm:$0xf] %vm1279_vm2, %v1800_v56 }
 0x15e   :  { %1341 = vst.msk [vmem:[%s3558_s3 + $0xf4] sm:$0xf] %vm1279_vm2, %v1798_v35  ;;  %1384 = vrot.lane.b32.xlu0 %v3090_v36, %s2194_s0 }
 0x15f   :  { %1386 = vrot.lane.b32.xlu1 %v3128_v18, %s2194_s0 }
 0x162   :  { %1448 = vrot.lane.b32.xlu0 %v3101_v55, %s2194_s0 }
 0x163   :  { %1450 = vrot.lane.b32.xlu1 %v3137_v48, %s2194_s0 }
 0x166   :  { %1396 = vrot.lane.b32.xlu0 %v3169_v45, %s2194_s0 }
 0x167   :  { %1398 = vrot.lane.b32.xlu1 %v3180_v13, %s2194_s0 }
 0x16a   :  { %1460 = vrot.lane.b32.xlu0 %v1795_v33, %s2194_s0 }
 0x16b   :  { %1462 = vrot.lane.b32.xlu1 %v1796_v17, %s2194_s0 }
 0x16e   :  { %1392 = vrot.lane.b32.xlu0 %v3172_v34, %s2194_s0 }
 0x16f   :  { %1394 = vrot.lane.b32.xlu1 %v1762_v8, %s2194_s0 }
 0x172   :  { %1456 = vrot.lane.b32.xlu0 %v1793_v9, %s2194_s0 }
 0x173   :  { %1458 = vrot.lane.b32.xlu1 %v1794_v20, %s2194_s0 }
 0x176   :  { %1404 = vrot.lane.b32.xlu0 %v1767_v1, %s2194_s0 }
 0x177   :  { %1406 = vrot.lane.b32.xlu1 %v1768_v54, %s2194_s0 }
 0x178   :  { %v1413_v2 = vpop.permute.xlu0 %1412 }
 0x179   :  { %1570 = vst.msk [vmem:[%s3559_s4 + $0x88] sm:$0xf] %vm1279_vm2, %v1413_v2  ;;  %v1349_v39 = vpop.permute.xlu1 %1348 }
 0x17a   :  { %1538 = vst.msk [vmem:[%s3559_s4 + $0x8] sm:$0xf] %vm1279_vm2, %v1349_v39  ;;  %1400 = vrot.lane.b32.xlu0 %v1765_v7, %s2194_s0 }
 0x17b   :  { %1402 = vrot.lane.b32.xlu1 %v1766_v14, %s2194_s0 }
 0x17c   :  { %v1345_v36 = vpop.permute.xlu0 %1344 }
 0x17d   :  { %v1351_v55 = vpop.permute.xlu1 %1350  ;;  %1536 = vst.msk [vmem:[%s3559_s4] sm:$0xf] %vm1279_vm2, %v1345_v36 }
 0x17e   :  { %1539 = vst.msk [vmem:[%s3559_s4 + $0xc] sm:$0xf] %vm1279_vm2, %v1351_v55  ;;  %1464 = vrot.lane.b32.xlu0 %v1797_v58, %s2194_s0 }
 0x17f   :  { %1466 = vrot.lane.b32.xlu1 %v1798_v35, %s2194_s0 }
 0x180   :  { %v1409_v11 = vpop.permute.xlu0 %1408 }
 0x181   :  { %v1415_v18 = vpop.permute.xlu1 %1414  ;;  %1568 = vst.msk [vmem:[%s3559_s4 + $0x80] sm:$0xf] %vm1279_vm2, %v1409_v11 }
 0x182   :  { %1571 = vst.msk [vmem:[%s3559_s4 + $0x8c] sm:$0xf] %vm1279_vm2, %v1415_v18  ;;  %1468 = vrot.lane.b32.xlu0 %v1799_v42, %s2194_s0 }
 0x183   :  { %1470 = vrot.lane.b32.xlu1 %v1800_v56, %s2194_s0 }
 0x184   :  { %v1347_v48 = vpop.permute.xlu0 %1346 }
 0x185   :  { %v1411_v0 = vpop.permute.xlu1 %1410  ;;  %1537 = vst.msk [vmem:[%s3559_s4 + $0x4] sm:$0xf] %vm1279_vm2, %v1347_v48 }
 0x186   :  { %1569 = vst.msk [vmem:[%s3559_s4 + $0x84] sm:$0xf] %vm1279_vm2, %v1411_v0 }
 0x188   :  { %v1357_v30 = vpop.permute.xlu0 %1356 }
 0x189   :  { %v1359_v25 = vpop.permute.xlu1 %1358  ;;  %1542 = vst.msk [vmem:[%s3559_s4 + $0x18] sm:$0xf] %vm1279_vm2, %v1357_v30 }
 0x18a   :  { %1543 = vst.msk [vmem:[%s3559_s4 + $0x1c] sm:$0xf] %vm1279_vm2, %v1359_v25 }
 0x18c   :  { %v1421_v37 = vpop.permute.xlu0 %1420 }
 0x18d   :  { %v1423_v32 = vpop.permute.xlu1 %1422  ;;  %1574 = vst.msk [vmem:[%s3559_s4 + $0x98] sm:$0xf] %vm1279_vm2, %v1421_v37 }
 0x18e   :  { %1575 = vst.msk [vmem:[%s3559_s4 + $0x9c] sm:$0xf] %vm1279_vm2, %v1423_v32 }
 0x190   :  { %v1353_v19 = vpop.permute.xlu0 %1352 }
 0x191   :  { %v1355_v49 = vpop.permute.xlu1 %1354  ;;  %1540 = vst.msk [vmem:[%s3559_s4 + $0x10] sm:$0xf] %vm1279_vm2, %v1353_v19 }
 0x192   :  { %1541 = vst.msk [vmem:[%s3559_s4 + $0x14] sm:$0xf] %vm1279_vm2, %v1355_v49 }
 0x194   :  { %v1417_v44 = vpop.permute.xlu0 %1416 }
 0x195   :  { %v1419_v43 = vpop.permute.xlu1 %1418  ;;  %1572 = vst.msk [vmem:[%s3559_s4 + $0x90] sm:$0xf] %vm1279_vm2, %v1417_v44 }
 0x196   :  { %1573 = vst.msk [vmem:[%s3559_s4 + $0x94] sm:$0xf] %vm1279_vm2, %v1419_v43 }
 0x198   :  { %v1365_v29 = vpop.permute.xlu0 %1364 }
 0x199   :  { %v1367_v6 = vpop.permute.xlu1 %1366  ;;  %1546 = vst.msk [vmem:[%s3559_s4 + $0x28] sm:$0xf] %vm1279_vm2, %v1365_v29 }
 0x19a   :  { %1547 = vst.msk [vmem:[%s3559_s4 + $0x2c] sm:$0xf] %vm1279_vm2, %v1367_v6 }
 0x19c   :  { %v1429_v53 = vpop.permute.xlu0 %1428 }
 0x19d   :  { %v1431_v45 = vpop.permute.xlu1 %1430  ;;  %1578 = vst.msk [vmem:[%s3559_s4 + $0xa8] sm:$0xf] %vm1279_vm2, %v1429_v53 }
 0x19e   :  { %1579 = vst.msk [vmem:[%s3559_s4 + $0xac] sm:$0xf] %vm1279_vm2, %v1431_v45 }
 0x1a0   :  { %v1361_v46 = vpop.permute.xlu0 %1360 }
 0x1a1   :  { %v1363_v50 = vpop.permute.xlu1 %1362  ;;  %1544 = vst.msk [vmem:[%s3559_s4 + $0x20] sm:$0xf] %vm1279_vm2, %v1361_v46 }
 0x1a2   :  { %1545 = vst.msk [vmem:[%s3559_s4 + $0x24] sm:$0xf] %vm1279_vm2, %v1363_v50 }
 0x1a4   :  { %v1425_v34 = vpop.permute.xlu0 %1424 }
 0x1a5   :  { %v1427_v28 = vpop.permute.xlu1 %1426  ;;  %1576 = vst.msk [vmem:[%s3559_s4 + $0xa0] sm:$0xf] %vm1279_vm2, %v1425_v34 }
 0x1a6   :  { %1577 = vst.msk [vmem:[%s3559_s4 + $0xa4] sm:$0xf] %vm1279_vm2, %v1427_v28 }
 0x1a8   :  { %v1373_v15 = vpop.permute.xlu0 %1372 }
 0x1a9   :  { %v1375_v13 = vpop.permute.xlu1 %1374  ;;  %1550 = vst.msk [vmem:[%s3559_s4 + $0x38] sm:$0xf] %vm1279_vm2, %v1373_v15 }
 0x1aa   :  { %1551 = vst.msk [vmem:[%s3559_s4 + $0x3c] sm:$0xf] %vm1279_vm2, %v1375_v13 }
 0x1ac   :  { %v1437_v24 = vpop.permute.xlu0 %1436 }
 0x1ad   :  { %v1439_v40 = vpop.permute.xlu1 %1438  ;;  %1582 = vst.msk [vmem:[%s3559_s4 + $0xb8] sm:$0xf] %vm1279_vm2, %v1437_v24 }
 0x1ae   :  { %1583 = vst.msk [vmem:[%s3559_s4 + $0xbc] sm:$0xf] %vm1279_vm2, %v1439_v40 }
 0x1b0   :  { %v1369_v33 = vpop.permute.xlu0 %1368 }
 0x1b1   :  { %v1371_v5 = vpop.permute.xlu1 %1370  ;;  %1548 = vst.msk [vmem:[%s3559_s4 + $0x30] sm:$0xf] %vm1279_vm2, %v1369_v33 }
 0x1b2   :  { %1549 = vst.msk [vmem:[%s3559_s4 + $0x34] sm:$0xf] %vm1279_vm2, %v1371_v5 }
 0x1b4   :  { %v1433_v60 = vpop.permute.xlu0 %1432 }
 0x1b5   :  { %v1435_v8 = vpop.permute.xlu1 %1434  ;;  %1580 = vst.msk [vmem:[%s3559_s4 + $0xb0] sm:$0xf] %vm1279_vm2, %v1433_v60 }
 0x1b6   :  { %1581 = vst.msk [vmem:[%s3559_s4 + $0xb4] sm:$0xf] %vm1279_vm2, %v1435_v8 }
 0x1b8   :  { %v1381_v41 = vpop.permute.xlu0 %1380 }
 0x1b9   :  { %v1383_v38 = vpop.permute.xlu1 %1382  ;;  %1554 = vst.msk [vmem:[%s3559_s4 + $0x48] sm:$0xf] %vm1279_vm2, %v1381_v41 }
 0x1ba   :  { %1555 = vst.msk [vmem:[%s3559_s4 + $0x4c] sm:$0xf] %vm1279_vm2, %v1383_v38 }
 0x1bc   :  { %v1445_v9 = vpop.permute.xlu0 %1444 }
 0x1bd   :  { %v1447_v23 = vpop.permute.xlu1 %1446  ;;  %1586 = vst.msk [vmem:[%s3559_s4 + $0xc8] sm:$0xf] %vm1279_vm2, %v1445_v9 }
 0x1be   :  { %1587 = vst.msk [vmem:[%s3559_s4 + $0xcc] sm:$0xf] %vm1279_vm2, %v1447_v23 }
 0x1c0   :  { %v1377_v26 = vpop.permute.xlu0 %1376 }
 0x1c1   :  { %v1379_v17 = vpop.permute.xlu1 %1378  ;;  %1552 = vst.msk [vmem:[%s3559_s4 + $0x40] sm:$0xf] %vm1279_vm2, %v1377_v26 }
 0x1c2   :  { %1553 = vst.msk [vmem:[%s3559_s4 + $0x44] sm:$0xf] %vm1279_vm2, %v1379_v17 }
 0x1c4   :  { %v1441_v47 = vpop.permute.xlu0 %1440 }
 0x1c5   :  { %v1443_v22 = vpop.permute.xlu1 %1442  ;;  %1584 = vst.msk [vmem:[%s3559_s4 + $0xc0] sm:$0xf] %vm1279_vm2, %v1441_v47 }
 0x1c6   :  { %1585 = vst.msk [vmem:[%s3559_s4 + $0xc4] sm:$0xf] %vm1279_vm2, %v1443_v22 }
 0x1c8   :  { %v1389_v57 = vpop.permute.xlu0 %1388 }
 0x1c9   :  { %v1391_v20 = vpop.permute.xlu1 %1390  ;;  %1558 = vst.msk [vmem:[%s3559_s4 + $0x58] sm:$0xf] %vm1279_vm2, %v1389_v57 }
 0x1ca   :  { %1559 = vst.msk [vmem:[%s3559_s4 + $0x5c] sm:$0xf] %vm1279_vm2, %v1391_v20 }
 0x1cc   :  { %v1453_v3 = vpop.permute.xlu0 %1452 }
 0x1cd   :  { %v1455_v16 = vpop.permute.xlu1 %1454  ;;  %1590 = vst.msk [vmem:[%s3559_s4 + $0xd8] sm:$0xf] %vm1279_vm2, %v1453_v3 }
 0x1ce   :  { %1591 = vst.msk [vmem:[%s3559_s4 + $0xdc] sm:$0xf] %vm1279_vm2, %v1455_v16 }
 0x1d0   :  { %v1385_v27 = vpop.permute.xlu0 %1384 }
 0x1d1   :  { %v1387_v1 = vpop.permute.xlu1 %1386  ;;  %1556 = vst.msk [vmem:[%s3559_s4 + $0x50] sm:$0xf] %vm1279_vm2, %v1385_v27 }
 0x1d2   :  { %1557 = vst.msk [vmem:[%s3559_s4 + $0x54] sm:$0xf] %vm1279_vm2, %v1387_v1 }
 0x1d4   :  { %v1449_v31 = vpop.permute.xlu0 %1448 }
 0x1d5   :  { %v1451_v12 = vpop.permute.xlu1 %1450  ;;  %1588 = vst.msk [vmem:[%s3559_s4 + $0xd0] sm:$0xf] %vm1279_vm2, %v1449_v31 }
 0x1d6   :  { %1589 = vst.msk [vmem:[%s3559_s4 + $0xd4] sm:$0xf] %vm1279_vm2, %v1451_v12 }
 0x1d8   :  { %v1397_v4 = vpop.permute.xlu0 %1396 }
 0x1d9   :  { %v1399_v7 = vpop.permute.xlu1 %1398  ;;  %1562 = vst.msk [vmem:[%s3559_s4 + $0x68] sm:$0xf] %vm1279_vm2, %v1397_v4 }
 0x1da   :  { %1563 = vst.msk [vmem:[%s3559_s4 + $0x6c] sm:$0xf] %vm1279_vm2, %v1399_v7 }
 0x1dc   :  { %v1461_v62 = vpop.permute.xlu0 %1460 }
 0x1dd   :  { %v1463_v10 = vpop.permute.xlu1 %1462  ;;  %1594 = vst.msk [vmem:[%s3559_s4 + $0xe8] sm:$0xf] %vm1279_vm2, %v1461_v62 }
 0x1de   :  { %1595 = vst.msk [vmem:[%s3559_s4 + $0xec] sm:$0xf] %vm1279_vm2, %v1463_v10 }
 0x1e0   :  { %v1393_v54 = vpop.permute.xlu0 %1392 }
 0x1e1   :  { %v1395_v52 = vpop.permute.xlu1 %1394  ;;  %1560 = vst.msk [vmem:[%s3559_s4 + $0x60] sm:$0xf] %vm1279_vm2, %v1393_v54 }
 0x1e2   :  { %1561 = vst.msk [vmem:[%s3559_s4 + $0x64] sm:$0xf] %vm1279_vm2, %v1395_v52 }
 0x1e4   :  { %v1457_v59 = vpop.permute.xlu0 %1456 }
 0x1e5   :  { %v1459_v14 = vpop.permute.xlu1 %1458  ;;  %1592 = vst.msk [vmem:[%s3559_s4 + $0xe0] sm:$0xf] %vm1279_vm2, %v1457_v59 }
 0x1e6   :  { %1593 = vst.msk [vmem:[%s3559_s4 + $0xe4] sm:$0xf] %vm1279_vm2, %v1459_v14 }
 0x1e8   :  { %v1405_v63 = vpop.permute.xlu0 %1404 }
 0x1e9   :  { %v1407_v61 = vpop.permute.xlu1 %1406  ;;  %1566 = vst.msk [vmem:[%s3559_s4 + $0x78] sm:$0xf] %vm1279_vm2, %v1405_v63 }
 0x1ea   :  { %1567 = vst.msk [vmem:[%s3559_s4 + $0x7c] sm:$0xf] %vm1279_vm2, %v1407_v61 }
 0x1ec   :  { %v1401_v42 = vpop.permute.xlu0 %1400 }
 0x1ed   :  { %v1403_v21 = vpop.permute.xlu1 %1402  ;;  %1564 = vst.msk [vmem:[%s3559_s4 + $0x70] sm:$0xf] %vm1279_vm2, %v1401_v42 }
 0x1ee   :  { %1565 = vst.msk [vmem:[%s3559_s4 + $0x74] sm:$0xf] %vm1279_vm2, %v1403_v21 }
 0x1f0   :  { %v1465_v58 = vpop.permute.xlu0 %1464 }
 0x1f1   :  { %v1467_v51 = vpop.permute.xlu1 %1466  ;;  %1596 = vst.msk [vmem:[%s3559_s4 + $0xf0] sm:$0xf] %vm1279_vm2, %v1465_v58 }
 0x1f2   :  { %1597 = vst.msk [vmem:[%s3559_s4 + $0xf4] sm:$0xf] %vm1279_vm2, %v1467_v51 }
 0x1f4   :  { %v1469_v56 = vpop.permute.xlu0 %1468 }
 0x1f5   :  { %v1471_v35 = vpop.permute.xlu1 %1470  ;;  %1598 = vst.msk [vmem:[%s3559_s4 + $0xf8] sm:$0xf] %vm1279_vm2, %v1469_v56 }
 0x1f6   :  { %1599 = vst.msk [vmem:[%s3559_s4 + $0xfc] sm:$0xf] %vm1279_vm2, %v1471_v35 }

</bundles_post_ra>
